<compile_context>
chip_gen: v7x
topology: tpu7x:2x2x1
jax: 0.10.0
libtpu: 0.0.40
codegen_flags: <defaults>
</compile_context>

<pallas_src>
import functools

import jax
import jax.numpy as jnp
from jax.experimental import pallas as pl
from jax.experimental.pallas import tpu as pltpu

BN_EPS = 1e-5


def _round_up(x, m):
    return (x + m - 1) // m * m


# ---------------------------------------------------------------------------
# Pass 1: fc matmul + per-batch BatchNorm statistics (sum / sum-of-squares of h).
# ---------------------------------------------------------------------------
def _stats_kernel(x_ref, wfc_ref, bsum_ref, bsq_ref, *, tm, t_valid, mask_rows):
    t = pl.program_id(1)

    @pl.when(t == 0)
    def _():
        bsum_ref[...] = jnp.zeros_like(bsum_ref)
        bsq_ref[...] = jnp.zeros_like(bsq_ref)

    x = x_ref[...]                                              # (TM, F) f32
    if mask_rows:
        # Partial last tile along T: zero out-of-bounds rows so they contribute
        # exactly zero to the statistics (fc bias dropped -> no constant offset).
        row = t * tm + jax.lax.broadcasted_iota(jnp.int32, (tm, 1), 0)
        x = jnp.where(row < t_valid, x, 0.0)

    # fc (bias dropped -- it cancels inside BatchNorm); bf16 operands, f32 accum.
    h = jnp.dot(x.astype(jnp.bfloat16), wfc_ref[...],
                preferred_element_type=jnp.float32)             # (TM, H)
    bsum_ref[...] += jnp.sum(h, axis=0, keepdims=True)          # (1, H)
    bsq_ref[...] += jnp.sum(h * h, axis=0, keepdims=True)       # (1, H)


# ---------------------------------------------------------------------------
# Pass 2: folded BN + conv channel-attention branch + final gating.
# ---------------------------------------------------------------------------
def _apply_kernel(x_ref, wfc_ref, vecs_ref, bc1_ref, x1_ref, wc1_ref, wc2_ref,
                  out_ref):
    f32 = jnp.float32
    bf16 = jnp.bfloat16

    scale = vecs_ref[0:1, :]        # BN folded scale  (1, H)
    shift = vecs_ref[1:2, :]        # BN folded shift  (1, H)
    bc2 = vecs_ref[2:3, :]          # conv2 bias       (1, H)

    # fc (recomputed; bias cancels in BN), then hn = bn(fc(x)).
    h = jnp.dot(x_ref[...].astype(bf16), wfc_ref[...],
                preferred_element_type=f32)                     # (TM, H)
    hn = h * scale + shift

    # Channel-attention conv branch: k=1 Conv1d == per-row channel matmuls.
    c1 = jnp.maximum(
        jnp.dot(hn.astype(bf16), wc1_ref[...], preferred_element_type=f32)
        + bc1_ref[...], 0.0)                                    # (TM, HID)
    x2 = jax.nn.sigmoid(
        jnp.dot(c1.astype(bf16), wc2_ref[...], preferred_element_type=f32) + bc2)

    # Final gating: per-row conv attention * per-batch fc attention (precomputed).
    out_ref[...] = (hn * x2 * x1_ref[...]).astype(out_ref.dtype)


# ---------------------------------------------------------------------------
# Wrapper
# ---------------------------------------------------------------------------
@functools.partial(jax.jit, static_argnames=("row_block", "out_dtype"))
def landmark_encoder(x, params, *, row_block=512, out_dtype=jnp.bfloat16):
    """x: (B, T, L, 2) float32 landmarks.  Returns (B, T, H) in `out_dtype`."""
    B, T, L, D = x.shape
    F = L * D
    H = params["fc_w"].shape[0]            # 256
    HID = params["ca_conv1_w"].shape[0]    # 512

    if T <= row_block:
        TM = T                                       # full extent -> always legal
    else:
        TM = _round_up(row_block, 16)                # bf16 sublane packing
    NT = pl.cdiv(T, TM)
    mask_rows = (NT * TM != T)

    f32 = jnp.float32
    bf16 = jnp.bfloat16

    # Free view; weights are tiny one-time transposes/casts (PyTorch (out,in)->(in,out)).
    xf = x.reshape(B, T, F)
    wfc = params["fc_w"].T.astype(bf16)                         # (F, H)
    # NOTE: params["fc_b"] intentionally unused — a per-channel constant is removed
    # exactly by the BatchNorm that follows the Linear.
    wc1 = params["ca_conv1_w"][:, :, 0].T.astype(bf16)          # (H, HID)
    wc2 = params["ca_conv2_w"][:, :, 0].T.astype(bf16)          # (HID, H)
    bc1 = params["ca_conv1_b"].reshape(1, HID).astype(f32)      # (1, HID)

    x_idx = lambda b, t: (b, t, 0)
    w_idx = lambda b, t: (0, 0)
    b_idx = lambda b, t: (b, 0, 0)
    vmem_limit = 48 * 1024 * 1024

    # ---- pass 1: per-batch statistics ---------------------------------------
    bsum, bsq = pl.pallas_call(
        functools.partial(_stats_kernel, tm=TM, t_valid=T, mask_rows=mask_rows),
        grid=(B, NT),
        in_specs=[pl.BlockSpec((None, TM, F), x_idx),           # x tile (pipelined)
                  pl.BlockSpec((F, H), w_idx)],                 # resident fc weight
        out_specs=[pl.BlockSpec((None, 1, H), b_idx),
                   pl.BlockSpec((None, 1, H), b_idx)],
        out_shape=[jax.ShapeDtypeStruct((B, 1, H), f32),
                   jax.ShapeDtypeStruct((B, 1, H), f32)],
        compiler_params=pltpu.CompilerParams(
            dimension_semantics=("parallel", "arbitrary"),      # batch axis -> megacore
            vmem_limit_bytes=vmem_limit),
        cost_estimate=pl.CostEstimate(
            flops=2 * B * NT * TM * F * H,
            transcendentals=0,
            bytes_accessed=B * T * F * 4 + F * H * 2 + 2 * B * H * 4),
    )(xf, wfc)

    # ---- hoisted per-batch / per-channel math (tiny, plain JAX, f32) --------
    n = B * T
    csum = jnp.sum(bsum[:, 0, :], axis=0)                       # (H,)
    csq = jnp.sum(bsq[:, 0, :], axis=0)                         # (H,)
    mean = csum / n
    var = jnp.maximum(csq / n - mean * mean, 0.0)
    scale = params["bn_w"] * jax.lax.rsqrt(var + BN_EPS)        # BN fold
    shift = params["bn_b"] - mean * scale
    g = bsum[:, 0, :] * (1.0 / T) * scale + shift               # (B, H) GAP of bn(fc(x))
    a1 = jnp.maximum(g @ params["ca_fc1_w"].T, 0.0)             # (B, HID)
    x1 = jax.nn.sigmoid(a1 @ params["ca_fc2_w"].T)              # (B, H) fc-attention gate
    x1 = x1.reshape(B, 1, H).astype(f32)
    vecs = jnp.stack([scale, shift, params["ca_conv2_b"]]).astype(f32)   # (3, H)

    # ---- pass 2: normalize + conv channel attention + gating ----------------
    out_bytes = jnp.dtype(out_dtype).itemsize
    out = pl.pallas_call(
        _apply_kernel,
        grid=(B, NT),
        in_specs=[pl.BlockSpec((None, TM, F), x_idx),           # x tile (pipelined)
                  pl.BlockSpec((F, H), w_idx),                  # fc weight (resident)
                  pl.BlockSpec((3, H), w_idx),                  # scale / shift / bc2
                  pl.BlockSpec((1, HID), w_idx),                # bc1
                  pl.BlockSpec((None, 1, H), b_idx),            # per-batch fc gate x1
                  pl.BlockSpec((H, HID), w_idx),                # attn conv1 weight
                  pl.BlockSpec((HID, H), w_idx)],               # attn conv2 weight
        out_specs=pl.BlockSpec((None, TM, H), x_idx),
        out_shape=jax.ShapeDtypeStruct((B, T, H), out_dtype),
        compiler_params=pltpu.CompilerParams(
            dimension_semantics=("parallel", "parallel"),
            vmem_limit_bytes=vmem_limit),
        cost_estimate=pl.CostEstimate(
            flops=2 * B * NT * TM * (F * H + 2 * H * HID),
            transcendentals=B * NT * TM * H,
            bytes_accessed=B * T * F * 4 + B * T * H * out_bytes
            + F * H * 2 + 2 * H * HID * 2 + (3 * H + HID) * 4),
    )(xf, wfc, vecs, bc1, x1, wc1, wc2)

    return out          # (B, T, H), no post-kernel slice/reshape


# ---------------------------------------------------------------------------
# Pure-JAX reference (mirrors the PyTorch forward, training-mode BatchNorm, f32).
# ---------------------------------------------------------------------------
def landmark_encoder_reference(x, p):
    B, T, L, D = x.shape
    xf = x.reshape(B, T, L * D)
    h = xf @ p["fc_w"].T + p["fc_b"]                            # (B, T, H)
    hc = h.reshape(B * T, -1)
    mean = hc.mean(0)
    var = ((hc - mean) ** 2).mean(0)
    hn = (hc - mean) / jnp.sqrt(var + BN_EPS) * p["bn_w"] + p["bn_b"]
    hn = hn.reshape(B, T, -1)
    g = hn.mean(axis=1)
    x1 = jax.nn.sigmoid(jnp.maximum(g @ p["ca_fc1_w"].T, 0.0) @ p["ca_fc2_w"].T)
    c1 = jnp.maximum(hn @ p["ca_conv1_w"][:, :, 0].T + p["ca_conv1_b"], 0.0)
    x2 = jax.nn.sigmoid(c1 @ p["ca_conv2_w"][:, :, 0].T + p["ca_conv2_b"])
    return hn * (x1[:, None, :] * x2)


def init_params(key, in_feat=262, hidden=256, ca_hidden=512, ca_out=256):
    ks = jax.random.split(key, 10)
    n = lambda k, shp, s: (jax.random.normal(k, shp, jnp.float32) * s)
    return {
        "fc_w": n(ks[0], (hidden, in_feat), 0.05),
        "fc_b": n(ks[1], (hidden,), 0.05),
        "bn_w": 1.0 + n(ks[2], (hidden,), 0.05),
        "bn_b": n(ks[3], (hidden,), 0.05),
        "ca_fc1_w": n(ks[4], (ca_hidden, hidden), 0.05),
        "ca_fc2_w": n(ks[5], (ca_out, ca_hidden), 0.05),
        "ca_conv1_w": n(ks[6], (ca_hidden, hidden, 1), 0.05),
        "ca_conv1_b": n(ks[7], (ca_hidden,), 0.05),
        "ca_conv2_w": n(ks[8], (ca_out, ca_hidden, 1), 0.05),
        "ca_conv2_b": n(ks[9], (ca_out,), 0.05),
    }


if __name__ == "__main__":
    key = jax.random.PRNGKey(0)
    k_x, k_p = jax.random.split(key)

    B, T, L, D = 2, 8, 131, 2            # module's default landmark dims, small B/T
    x = jax.random.normal(k_x, (B, T, L, D), jnp.float32)
    params = init_params(k_p, in_feat=L * D, hidden=256, ca_hidden=512, ca_out=256)

    out = landmark_encoder(x, params)
    out = jax.block_until_ready(out)

    ref = landmark_encoder_reference(x, params)
    assert out.shape == (B, T, 256), out.shape
    out_f32 = out.astype(jnp.float32)
    max_err = float(jnp.abs(out_f32 - ref).max())
    # bf16 matmul operands + bf16 output (f32 accumulation) -> relaxed tolerance.
    assert jnp.allclose(out_f32, ref, rtol=2e-2, atol=2e-2), max_err
    print("KERNEL_OK")
</pallas_src>

<mosaic_0001>
module attributes {stable_mosaic.version = 11 : i64} {
  func.func @_stats_kernel(%arg0: i32, %arg1: i32, %arg2: memref<1x8x262xf32, #tpu.memory_space<vmem>>, %arg3: memref<262x256xbf16, #tpu.memory_space<vmem>>, %arg4: memref<1x1x256xf32, #tpu.memory_space<vmem>>, %arg5: memref<1x1x256xf32, #tpu.memory_space<vmem>>) attributes {dimension_semantics = [#tpu.dimension_semantics<parallel>, #tpu.dimension_semantics<arbitrary>], iteration_bounds = array<i64: 2, 1>, scalar_prefetch = 0 : i64, scratch_operands = 0 : i64, tpu.core_type = #tpu.core_type<tc>, window_params = [{transform_indices = @transform_0, window_bounds = array<i64: 1, 8, 262>}, {pipeline_mode = #tpu.pipeline_mode<synchronous>, transform_indices = @transform_1, window_bounds = array<i64: 262, 256>}, {transform_indices = @transform_2, window_bounds = array<i64: 1, 1, 256>}, {transform_indices = @transform_3, window_bounds = array<i64: 1, 1, 256>}]} {
    %c0_i32 = arith.constant 0 : i32
    %0 = arith.cmpi eq, %arg1, %c0_i32 : i32
    %1 = arith.extui %0 : i1 to i32
    %c0_i32_0 = arith.constant 0 : i32
    %2 = arith.cmpi ne, %1, %c0_i32_0 : i32
    scf.if %2 {
      %cst_19 = arith.constant 0.000000e+00 : f32
      %25 = vector.broadcast %cst_19 : f32 to vector<1x256xf32>
      %c0_20 = arith.constant 0 : index
      %c0_21 = arith.constant 0 : index
      %c0_22 = arith.constant 0 : index
      %26 = vector.load %arg4[%c0_20, %c0_21, %c0_22] : memref<1x1x256xf32, #tpu.memory_space<vmem>>, vector<1x1x256xf32>
      %27 = vector.shape_cast %26 : vector<1x1x256xf32> to vector<1x256xf32>
      %28 = vector.shape_cast %25 : vector<1x256xf32> to vector<1x1x256xf32>
      tpu.vector_store %arg4[%c0_20, %c0_21, %c0_22], %28 {strides = array<i32>} : memref<1x1x256xf32, #tpu.memory_space<vmem>>, vector<1x1x256xf32>,
      %cst_23 = arith.constant 0.000000e+00 : f32
      %29 = vector.broadcast %cst_23 : f32 to vector<1x256xf32>
      %c0_24 = arith.constant 0 : index
      %c0_25 = arith.constant 0 : index
      %c0_26 = arith.constant 0 : index
      %30 = vector.load %arg5[%c0_24, %c0_25, %c0_26] : memref<1x1x256xf32, #tpu.memory_space<vmem>>, vector<1x1x256xf32>
      %31 = vector.shape_cast %30 : vector<1x1x256xf32> to vector<1x256xf32>
      %32 = vector.shape_cast %29 : vector<1x256xf32> to vector<1x1x256xf32>
      tpu.vector_store %arg5[%c0_24, %c0_25, %c0_26], %32 {strides = array<i32>} : memref<1x1x256xf32, #tpu.memory_space<vmem>>, vector<1x1x256xf32>,
    } else {
    }
    %c0 = arith.constant 0 : index
    %c0_1 = arith.constant 0 : index
    %c0_2 = arith.constant 0 : index
    %3 = vector.load %arg2[%c0, %c0_1, %c0_2] : memref<1x8x262xf32, #tpu.memory_space<vmem>>, vector<1x8x262xf32>
    %4 = vector.shape_cast %3 : vector<1x8x262xf32> to vector<8x262xf32>
    %5 = arith.truncf %4 : vector<8x262xf32> to vector<8x262xbf16>
    %c0_3 = arith.constant 0 : index
    %c0_4 = arith.constant 0 : index
    %6 = vector.load %arg3[%c0_3, %c0_4] : memref<262x256xbf16, #tpu.memory_space<vmem>>, vector<262x256xbf16>
    %cst = arith.constant dense<0.000000e+00> : vector<8x256xf32>
    %7 = tpu.matmul %5, %6, %cst {dimension_numbers = #tpu.dot_dimension_numbers<[1], [0], [0], [1], [0, 0, 1, 1], [], []>} : vector<8x262xbf16>, vector<262x256xbf16>, vector<8x256xf32> -> vector<8x256xf32>
    %c0_5 = arith.constant 0 : index
    %c0_6 = arith.constant 0 : index
    %c0_7 = arith.constant 0 : index
    %8 = vector.load %arg4[%c0_5, %c0_6, %c0_7] : memref<1x1x256xf32, #tpu.memory_space<vmem>>, vector<1x1x256xf32>
    %9 = vector.shape_cast %8 : vector<1x1x256xf32> to vector<1x256xf32>
    %cst_8 = arith.constant dense<0.000000e+00> : vector<256xf32>
    %10 = vector.multi_reduction <add>, %7, %cst_8 [0] : vector<8x256xf32> to vector<256xf32>
    %11 = vector.shape_cast %10 : vector<256xf32> to vector<1x256xf32>
    %12 = arith.addf %9, %11 : vector<1x256xf32>
    %c0_9 = arith.constant 0 : index
    %c0_10 = arith.constant 0 : index
    %c0_11 = arith.constant 0 : index
    %13 = vector.load %arg4[%c0_9, %c0_10, %c0_11] : memref<1x1x256xf32, #tpu.memory_space<vmem>>, vector<1x1x256xf32>
    %14 = vector.shape_cast %13 : vector<1x1x256xf32> to vector<1x256xf32>
    %15 = vector.shape_cast %12 : vector<1x256xf32> to vector<1x1x256xf32>
    tpu.vector_store %arg4[%c0_9, %c0_10, %c0_11], %15 {strides = array<i32>} : memref<1x1x256xf32, #tpu.memory_space<vmem>>, vector<1x1x256xf32>,
    %c0_12 = arith.constant 0 : index
    %c0_13 = arith.constant 0 : index
    %c0_14 = arith.constant 0 : index
    %16 = vector.load %arg5[%c0_12, %c0_13, %c0_14] : memref<1x1x256xf32, #tpu.memory_space<vmem>>, vector<1x1x256xf32>
    %17 = vector.shape_cast %16 : vector<1x1x256xf32> to vector<1x256xf32>
    %18 = arith.mulf %7, %7 : vector<8x256xf32>
    %cst_15 = arith.constant dense<0.000000e+00> : vector<256xf32>
    %19 = vector.multi_reduction <add>, %18, %cst_15 [0] : vector<8x256xf32> to vector<256xf32>
    %20 = vector.shape_cast %19 : vector<256xf32> to vector<1x256xf32>
    %21 = arith.addf %17, %20 : vector<1x256xf32>
    %c0_16 = arith.constant 0 : index
    %c0_17 = arith.constant 0 : index
    %c0_18 = arith.constant 0 : index
    %22 = vector.load %arg5[%c0_16, %c0_17, %c0_18] : memref<1x1x256xf32, #tpu.memory_space<vmem>>, vector<1x1x256xf32>
    %23 = vector.shape_cast %22 : vector<1x1x256xf32> to vector<1x256xf32>
    %24 = vector.shape_cast %21 : vector<1x256xf32> to vector<1x1x256xf32>
    tpu.vector_store %arg5[%c0_16, %c0_17, %c0_18], %24 {strides = array<i32>} : memref<1x1x256xf32, #tpu.memory_space<vmem>>, vector<1x1x256xf32>,
    return
  }
  func.func @transform_0(%arg0: i32, %arg1: i32) -> (i32, i32, i32) {
    %c0_i32 = arith.constant 0 : i32
    %c0_i32_0 = arith.constant 0 : i32
    return %arg0, %arg1, %c0_i32 : i32, i32, i32
  }
  func.func @transform_1(%arg0: i32, %arg1: i32) -> (i32, i32) {
    %c0_i32 = arith.constant 0 : i32
    %c0_i32_0 = arith.constant 0 : i32
    %c0_i32_1 = arith.constant 0 : i32
    return %c0_i32, %c0_i32_0 : i32, i32
  }
  func.func @transform_2(%arg0: i32, %arg1: i32) -> (i32, i32, i32) {
    %c0_i32 = arith.constant 0 : i32
    %c0_i32_0 = arith.constant 0 : i32
    %c0_i32_1 = arith.constant 0 : i32
    return %arg0, %c0_i32, %c0_i32_0 : i32, i32, i32
  }
  func.func @transform_3(%arg0: i32, %arg1: i32) -> (i32, i32, i32) {
    %c0_i32 = arith.constant 0 : i32
    %c0_i32_0 = arith.constant 0 : i32
    %c0_i32_1 = arith.constant 0 : i32
    return %arg0, %c0_i32, %c0_i32_0 : i32, i32, i32
  }
}

module attributes {stable_mosaic.version = 11 : i64} {
  func.func @_apply_kernel(%arg0: i32, %arg1: i32, %arg2: memref<1x8x262xf32, #tpu.memory_space<vmem>>, %arg3: memref<262x256xbf16, #tpu.memory_space<vmem>>, %arg4: memref<3x256xf32, #tpu.memory_space<vmem>>, %arg5: memref<1x512xf32, #tpu.memory_space<vmem>>, %arg6: memref<1x1x256xf32, #tpu.memory_space<vmem>>, %arg7: memref<256x512xbf16, #tpu.memory_space<vmem>>, %arg8: memref<512x256xbf16, #tpu.memory_space<vmem>>, %arg9: memref<1x8x256xbf16, #tpu.memory_space<vmem>>) attributes {dimension_semantics = [#tpu.dimension_semantics<parallel>, #tpu.dimension_semantics<parallel>], iteration_bounds = array<i64: 2, 1>, scalar_prefetch = 0 : i64, scratch_operands = 0 : i64, tpu.core_type = #tpu.core_type<tc>, window_params = [{transform_indices = @transform_0, window_bounds = array<i64: 1, 8, 262>}, {pipeline_mode = #tpu.pipeline_mode<synchronous>, transform_indices = @transform_1, window_bounds = array<i64: 262, 256>}, {pipeline_mode = #tpu.pipeline_mode<synchronous>, transform_indices = @transform_2, window_bounds = array<i64: 3, 256>}, {pipeline_mode = #tpu.pipeline_mode<synchronous>, transform_indices = @transform_3, window_bounds = array<i64: 1, 512>}, {transform_indices = @transform_4, window_bounds = array<i64: 1, 1, 256>}, {pipeline_mode = #tpu.pipeline_mode<synchronous>, transform_indices = @transform_5, window_bounds = array<i64: 256, 512>}, {pipeline_mode = #tpu.pipeline_mode<synchronous>, transform_indices = @transform_6, window_bounds = array<i64: 512, 256>}, {transform_indices = @transform_7, window_bounds = array<i64: 1, 8, 256>}]} {
    %c0 = arith.constant 0 : index
    %c0_0 = arith.constant 0 : index
    %0 = vector.load %arg4[%c0, %c0_0] : memref<3x256xf32, #tpu.memory_space<vmem>>, vector<1x256xf32>
    %c1 = arith.constant 1 : index
    %c0_1 = arith.constant 0 : index
    %1 = vector.load %arg4[%c1, %c0_1] : memref<3x256xf32, #tpu.memory_space<vmem>>, vector<1x256xf32>
    %c2 = arith.constant 2 : index
    %c0_2 = arith.constant 0 : index
    %2 = vector.load %arg4[%c2, %c0_2] : memref<3x256xf32, #tpu.memory_space<vmem>>, vector<1x256xf32>
    %c0_3 = arith.constant 0 : index
    %c0_4 = arith.constant 0 : index
    %c0_5 = arith.constant 0 : index
    %3 = vector.load %arg2[%c0_3, %c0_4, %c0_5] : memref<1x8x262xf32, #tpu.memory_space<vmem>>, vector<1x8x262xf32>
    %4 = vector.shape_cast %3 : vector<1x8x262xf32> to vector<8x262xf32>
    %5 = arith.truncf %4 : vector<8x262xf32> to vector<8x262xbf16>
    %c0_6 = arith.constant 0 : index
    %c0_7 = arith.constant 0 : index
    %6 = vector.load %arg3[%c0_6, %c0_7] : memref<262x256xbf16, #tpu.memory_space<vmem>>, vector<262x256xbf16>
    %cst = arith.constant dense<0.000000e+00> : vector<8x256xf32>
    %7 = tpu.matmul %5, %6, %cst {dimension_numbers = #tpu.dot_dimension_numbers<[1], [0], [0], [1], [0, 0, 1, 1], [], []>} : vector<8x262xbf16>, vector<262x256xbf16>, vector<8x256xf32> -> vector<8x256xf32>
    %8 = vector.broadcast %0 : vector<1x256xf32> to vector<8x256xf32>
    %9 = arith.mulf %7, %8 : vector<8x256xf32>
    %10 = vector.broadcast %1 : vector<1x256xf32> to vector<8x256xf32>
    %11 = arith.addf %9, %10 : vector<8x256xf32>
    %12 = arith.truncf %11 : vector<8x256xf32> to vector<8x256xbf16>
    %c0_8 = arith.constant 0 : index
    %c0_9 = arith.constant 0 : index
    %13 = vector.load %arg7[%c0_8, %c0_9] : memref<256x512xbf16, #tpu.memory_space<vmem>>, vector<256x512xbf16>
    %cst_10 = arith.constant dense<0.000000e+00> : vector<8x512xf32>
    %14 = tpu.matmul %12, %13, %cst_10 {dimension_numbers = #tpu.dot_dimension_numbers<[1], [0], [0], [1], [0, 0, 1, 1], [], []>} : vector<8x256xbf16>, vector<256x512xbf16>, vector<8x512xf32> -> vector<8x512xf32>
    %c0_11 = arith.constant 0 : index
    %c0_12 = arith.constant 0 : index
    %15 = vector.load %arg5[%c0_11, %c0_12] : memref<1x512xf32, #tpu.memory_space<vmem>>, vector<1x512xf32>
    %16 = vector.broadcast %15 : vector<1x512xf32> to vector<8x512xf32>
    %17 = arith.addf %14, %16 : vector<8x512xf32>
    %cst_13 = arith.constant 0.000000e+00 : f32
    %18 = vector.broadcast %cst_13 : f32 to vector<8x512xf32>
    %19 = arith.maximumf %17, %18 : vector<8x512xf32>
    %20 = arith.truncf %19 : vector<8x512xf32> to vector<8x512xbf16>
    %c0_14 = arith.constant 0 : index
    %c0_15 = arith.constant 0 : index
    %21 = vector.load %arg8[%c0_14, %c0_15] : memref<512x256xbf16, #tpu.memory_space<vmem>>, vector<512x256xbf16>
    %cst_16 = arith.constant dense<0.000000e+00> : vector<8x256xf32>
    %22 = tpu.matmul %20, %21, %cst_16 {dimension_numbers = #tpu.dot_dimension_numbers<[1], [0], [0], [1], [0, 0, 1, 1], [], []>} : vector<8x512xbf16>, vector<512x256xbf16>, vector<8x256xf32> -> vector<8x256xf32>
    %23 = vector.broadcast %2 : vector<1x256xf32> to vector<8x256xf32>
    %24 = arith.addf %22, %23 : vector<8x256xf32>
    %25 = arith.negf %24 : vector<8x256xf32>
    %26 = math.exp %25 : vector<8x256xf32>
    %cst_17 = arith.constant 1.000000e+00 : f32
    %27 = vector.broadcast %cst_17 : f32 to vector<8x256xf32>
    %28 = arith.addf %27, %26 : vector<8x256xf32>
    %29 = arith.divf %27, %28 : vector<8x256xf32>
    %30 = arith.mulf %11, %29 : vector<8x256xf32>
    %c0_18 = arith.constant 0 : index
    %c0_19 = arith.constant 0 : index
    %c0_20 = arith.constant 0 : index
    %31 = vector.load %arg6[%c0_18, %c0_19, %c0_20] : memref<1x1x256xf32, #tpu.memory_space<vmem>>, vector<1x1x256xf32>
    %32 = vector.shape_cast %31 : vector<1x1x256xf32> to vector<1x256xf32>
    %33 = vector.broadcast %32 : vector<1x256xf32> to vector<8x256xf32>
    %34 = arith.mulf %30, %33 : vector<8x256xf32>
    %35 = arith.truncf %34 : vector<8x256xf32> to vector<8x256xbf16>
    %c0_21 = arith.constant 0 : index
    %c0_22 = arith.constant 0 : index
    %c0_23 = arith.constant 0 : index
    %36 = vector.load %arg9[%c0_21, %c0_22, %c0_23] : memref<1x8x256xbf16, #tpu.memory_space<vmem>>, vector<1x8x256xbf16>
    %37 = vector.shape_cast %36 : vector<1x8x256xbf16> to vector<8x256xbf16>
    %38 = vector.shape_cast %35 : vector<8x256xbf16> to vector<1x8x256xbf16>
    tpu.vector_store %arg9[%c0_21, %c0_22, %c0_23], %38 {strides = array<i32>} : memref<1x8x256xbf16, #tpu.memory_space<vmem>>, vector<1x8x256xbf16>,
    return
  }
  func.func @transform_0(%arg0: i32, %arg1: i32) -> (i32, i32, i32) {
    %c0_i32 = arith.constant 0 : i32
    %c0_i32_0 = arith.constant 0 : i32
    return %arg0, %arg1, %c0_i32 : i32, i32, i32
  }
  func.func @transform_1(%arg0: i32, %arg1: i32) -> (i32, i32) {
    %c0_i32 = arith.constant 0 : i32
    %c0_i32_0 = arith.constant 0 : i32
    %c0_i32_1 = arith.constant 0 : i32
    return %c0_i32, %c0_i32_0 : i32, i32
  }
  func.func @transform_2(%arg0: i32, %arg1: i32) -> (i32, i32) {
    %c0_i32 = arith.constant 0 : i32
    %c0_i32_0 = arith.constant 0 : i32
    %c0_i32_1 = arith.constant 0 : i32
    return %c0_i32, %c0_i32_0 : i32, i32
  }
  func.func @transform_3(%arg0: i32, %arg1: i32) -> (i32, i32) {
    %c0_i32 = arith.constant 0 : i32
    %c0_i32_0 = arith.constant 0 : i32
    %c0_i32_1 = arith.constant 0 : i32
    return %c0_i32, %c0_i32_0 : i32, i32
  }
  func.func @transform_4(%arg0: i32, %arg1: i32) -> (i32, i32, i32) {
    %c0_i32 = arith.constant 0 : i32
    %c0_i32_0 = arith.constant 0 : i32
    %c0_i32_1 = arith.constant 0 : i32
    return %arg0, %c0_i32, %c0_i32_0 : i32, i32, i32
  }
  func.func @transform_5(%arg0: i32, %arg1: i32) -> (i32, i32) {
    %c0_i32 = arith.constant 0 : i32
    %c0_i32_0 = arith.constant 0 : i32
    %c0_i32_1 = arith.constant 0 : i32
    return %c0_i32, %c0_i32_0 : i32, i32
  }
  func.func @transform_6(%arg0: i32, %arg1: i32) -> (i32, i32) {
    %c0_i32 = arith.constant 0 : i32
    %c0_i32_0 = arith.constant 0 : i32
    %c0_i32_1 = arith.constant 0 : i32
    return %c0_i32, %c0_i32_0 : i32, i32
  }
  func.func @transform_7(%arg0: i32, %arg1: i32) -> (i32, i32, i32) {
    %c0_i32 = arith.constant 0 : i32
    %c0_i32_0 = arith.constant 0 : i32
    return %arg0, %arg1, %c0_i32 : i32, i32, i32
  }
}

</mosaic_0001>

<bundles_post_ra>
// kernel: landmark_encoder.2
= control target key start
LH: loop header
LB: loop body
LE: loop exit
PB: predicated region body
PF: predicated region fallthrough
CT: control target
= control target key end

     0   :  { %s860_s12 = smov 0   ;;  %s862_s13 = smov 0   ;;  %s1024_s0 = inlined_call_operand.vmem [shape: f32[2,8,262], index: 0, kind: input, shape index: {}]   ;;  %s1025_s1 = inlined_call_operand.vmem [shape: bf16[262,256], index: 1, kind: input, shape index: {}]   ;;  %s1026_s2 = inlined_call_operand.vmem [shape: f32[2,1,256], index: 2, kind: output, shape index: {0}]   ;;  %s1027_s3 = inlined_call_operand.vmem [shape: f32[2,1,256], index: 3, kind: output, shape index: {1}]  }
   0x1   :  { %s864_s14 = smov 0  }
   0x2 LB: > { %s26_s15 = sadd.s32 1, %s831_s13  ;;  %p691_p0 = scmp.ge.s32.totalorder %s835_s14, 1  ;;  %s835_s14 = sphi %s864_s14, %s14_s14   ;;  %s831_s13 = sphi %s862_s13, %s1031_s13   ;;  %s827_s12 = sphi %s860_s12, %s1030_s12  }
   0x3   : > { %p28_p1 = scmp.ge.s32.totalorder %s26_s15, 2  ;;  %p158_p2 = scmp.lt.s32.totalorder %s835_s14, 3 }
   0x5   : > { %s1033_s15 = smov (%p28_p1, %s26_s15), 0  ;;  %p159_p3 = pnand %p691_p0, %p158_p2 }
   0x6   : > { %v763_v0 = vld [vmem:[%s1025_s1 + $0x4] ss:$8 sps:$4 sm:$0xff] (!%p159_p3)   ;;  %v211_v1 = vlaneseq (!%p159_p3)  ;;  %v765_v2 = vld [vmem:[%s1025_s1] ss:$8 sps:$4 sm:$0xff] (!%p159_p3)   ;;  %v837_v3 = vmov (!%p159_p3), 0   ;;  %p189_p4 = scmp.lt.s32.totalorder (!%p159_p3), %s827_s12, 1 }
   0x7   : > { %162 = sbr.rel (%p159_p3) target bundleno = 309 (0x135), region = 28  ;;  %505 = vmatprep.mubr.bf16.mxu0 (!%p159_p3), %v837_v3  ;;  %432 = vmatprep.subr.bf16.mxu1 (!%p159_p3), %v763_v0  ;;  %v766_v4 = vld [vmem:[%s1025_s1 + $0x14] ss:$8 sps:$4 sm:$0xff] (!%p159_p3)   ;;  %v768_v5 = vld [vmem:[%s1025_s1 + $0x10] ss:$8 sps:$4 sm:$0xff] (!%p159_p3)   ;;  %v838_v9 = vmov (!%p159_p3), 0.0  }
   0x8   : > { %433 = vmatpush1.bf16.msra.mxu1 (!%p159_p3), %v765_v2  ;;  %v769_v6 = vld [vmem:[%s1025_s1 + $0x24] ss:$8 sps:$4 sm:$0xff] (!%p159_p3)   ;;  %vm894_vm0 = vcmp.lt.s32.totalorder (!%p159_p3), %v211_v1, 256  ;;  %v771_v8 = vld [vmem:[%s1025_s1 + $0x20] ss:$8 sps:$4 sm:$0xff] (!%p159_p3)   ;;  %vm425_vm1 = vcmask (!%p159_p3), 1042432  }
   0x9   : > { %434 = vmatprep.subr.bf16.mxu1 (!%p159_p3), %v766_v4  ;;  %v772_v10 = vld [vmem:[%s1025_s1 + $0x34] ss:$8 sps:$4 sm:$0xff] (!%p159_p3)   ;;  %v774_v11 = vld [vmem:[%s1025_s1 + $0x30] ss:$8 sps:$4 sm:$0xff] (!%p159_p3)   ;;  %v775_v12 = vld [vmem:[%s1025_s1 + $0x44] ss:$8 sps:$4 sm:$0xff] (!%p159_p3)  }
   0xa   : > { %v777_v13 = vld [vmem:[%s1025_s1 + $0x40] ss:$8 sps:$4 sm:$0xff] (!%p159_p3)   ;;  %v778_v14 = vld [vmem:[%s1025_s1 + $0x54] ss:$8 sps:$4 sm:$0xff] (!%p159_p3)   ;;  %v780_v15 = vld [vmem:[%s1025_s1 + $0x50] ss:$8 sps:$4 sm:$0xff] (!%p159_p3)  }
   0xb   : > { %v781_v16 = vld [vmem:[%s1025_s1 + $0x64] ss:$8 sps:$4 sm:$0xff] (!%p159_p3)   ;;  %v783_v22 = vld [vmem:[%s1025_s1 + $0x60] ss:$8 sps:$4 sm:$0xff] (!%p159_p3)   ;;  %v784_v26 = vld [vmem:[%s1025_s1 + $0x74] ss:$8 sps:$4 sm:$0xff] (!%p159_p3)  }
   0xc   : > { %435 = vmatpush1.bf16.msra.mxu1 (!%p159_p3), %v768_v5  ;;  %v255_v17 = vld [vmem:[%s1025_s1 + $0x100] sm:$0x77] (!%p159_p3)  ;;  %vm421_vm2 = vcmask (!%p159_p3), 48128   ;;  %v786_v27 = vld [vmem:[%s1025_s1 + $0x70] ss:$8 sps:$4 sm:$0xff] (!%p159_p3)  }
   0xd   : > { %436 = vmatprep.subr.bf16.mxu1 (!%p159_p3), %v769_v6  ;;  %v728_v18 = vcombine.high (!%p159_p3), %v255_v17, %v255_v17  ;;  %v727_v19 = vcombine.low (!%p159_p3), %v255_v17, %v255_v17  ;;  %v787_v28 = vld [vmem:[%s1025_s1 + $0x84] ss:$8 sps:$4 sm:$0xff] (!%p159_p3)   ;;  %v789_v29 = vld [vmem:[%s1025_s1 + $0x80] ss:$8 sps:$4 sm:$0xff] (!%p159_p3)   ;;  %v790_v30 = vld [vmem:[%s1025_s1 + $0x94] ss:$8 sps:$4 sm:$0xff] (!%p159_p3)  }
   0xe   : > { %s1035_s12 = smov (!%p189_p4, %s827_s12), 1  ;;  %v792_v31 = vld [vmem:[%s1025_s1 + $0x90] ss:$8 sps:$4 sm:$0xff]   ;;  %v793_v32 = vld [vmem:[%s1025_s1 + $0xa4] ss:$8 sps:$4 sm:$0xff]  }
   0xf   : > { %s693_s26 = sshll.u32 %s1035_s12, 1  ;;  %s735_s18 = smul.u32 24, %s1035_s12  ;;  %729 = vmatprep.subr.msk.bf16.mxu0 %vm425_vm1, %v728_v18  ;;  %v427_v23 = vsel %vm425_vm1, %v727_v19, 0  ;;  %v795_v33 = vld [vmem:[%s1025_s1 + $0xa0] ss:$8 sps:$4 sm:$0xff]  }
  0x10   : > { %s901_s29 = scalar_lea.vmem %s1026_s2, %s693_s26  ;;  %s906_s5 = scalar_lea.vmem %s1027_s3, %s693_s26  ;;  %437 = vmatpush1.bf16.msra.mxu1 %v771_v8  ;;  %474 = vmatpush1.bf16.msra.mxu0 %v427_v23  ;;  %v796_v34 = vld [vmem:[%s1025_s1 + $0xb4] ss:$8 sps:$4 sm:$0xff]   ;;  %v798_v35 = vld [vmem:[%s1025_s1 + $0xb0] ss:$8 sps:$4 sm:$0xff]   ;;  %v799_v36 = vld [vmem:[%s1025_s1 + $0xc4] ss:$8 sps:$4 sm:$0xff]  }
  0x11   : > { %215 = vst.msk [vmem:[%s901_s29] sm:$0x3] %vm894_vm0, %v838_v9  ;;  %216 = vst.msk [vmem:[%s906_s5] sm:$0x3] %vm894_vm0, %v838_v9  ;;  %438 = vmatprep.subr.bf16.mxu1 %v772_v10  ;;  %s935_s25 = scalar_lea.vmem %s1024_s0, %s735_s18  ;;  %v801_v37 = vld [vmem:[%s1025_s1 + $0xc0] ss:$8 sps:$4 sm:$0xff]  }
  0x12   : > { %v219_v20 = vld [vmem:[%s935_s25 + $0x10] sm:$0xff]  ;;  %v218_v21 = vld [vmem:[%s935_s25 + $0x8] sm:$0xff]  ;;  %v217_v44 = vld [vmem:[%s935_s25] sm:$0xff]  ;;  %v839_v63 = vmov 1966171168  }
  0x13   : > { %v222_v24 = vpack.c.bf16 %v219_v20, %v219_v20  ;;  %v221_v25 = vpack.c.bf16 %v218_v21, %v218_v21  ;;  %v802_v38 = vld [vmem:[%s1025_s1 + $0xd4] ss:$8 sps:$4 sm:$0xff]   ;;  %v804_v39 = vld [vmem:[%s1025_s1 + $0xd0] ss:$8 sps:$4 sm:$0xff]   ;;  %v805_v40 = vld [vmem:[%s1025_s1 + $0xe4] ss:$8 sps:$4 sm:$0xff]   ;;  %v220_v45 = vpack.c.bf16 %v217_v44, %v217_v44  ;;  %v531_v0 = vunpack.c.l.s4 %v839_v63 }
  0x14   : > { %439 = vmatpush1.bf16.msra.mxu1 %v774_v11  ;;  %v807_v41 = vld [vmem:[%s1025_s1 + $0xe0] ss:$8 sps:$4 sm:$0xff]   ;;  %v810_v42 = vld [vmem:[%s1025_s1 + $0xf4] ss:$8 sps:$4 sm:$0xff]   ;;  %v812_v43 = vld [vmem:[%s1025_s1 + $0xf0] ss:$8 sps:$4 sm:$0xff]  }
  0x15   : > { %440 = vmatprep.subr.bf16.mxu1 %v775_v12  ;;  %464 = vmatprep.mubr.bf16.mxu1 %v221_v25  ;;  %v532_v11 = vunpack.c.0.s8 %v531_v0  ;;  %v534_v12 = vshrl.u32 %v211_v1, 7 }
  0x16   : > { %730 = vmatmul.mubr.msk.bf16.vlgmr.msra.gmra.mrb[0].mxu0 %vm421_vm2, %v222_v24 }
  0x17   : > { %v535_v21 = vsub.s32 %v532_v11, %v534_v12 }
  0x18   : > { %441 = vmatpush1.bf16.msra.mxu1 %v777_v13  ;;  %v514_v1 = vld [vmem:[%s901_s29] sm:$0x3] }
  0x19   : > { %442 = vmatprep.subr.bf16.mxu1 %v778_v14 }
  0x1c   : > { %443 = vmatpush1.bf16.msra.mxu1 %v780_v15 }
  0x1d   : > { %444 = vmatprep.subr.bf16.mxu1 %v781_v16 }
  0x20   : > { %445 = vmatpush1.bf16.msra.mxu1 %v783_v22 }
  0x21   : > { %446 = vmatprep.subr.bf16.mxu1 %v784_v26 }
  0x24   : > { %447 = vmatpush1.bf16.msra.mxu1 %v786_v27 }
  0x25   : > { %448 = vmatprep.subr.bf16.mxu1 %v787_v28 }
  0x28   : > { %449 = vmatpush1.bf16.msra.mxu1 %v789_v29 }
  0x29   : > { %450 = vmatprep.subr.bf16.mxu1 %v790_v30  ;;  %v551_v30 = vld [vmem:[%s906_s5] sm:$0x3] }
  0x2c   : > { %451 = vmatpush1.bf16.msra.mxu1 %v792_v31 }
  0x2d   : > { %452 = vmatprep.subr.bf16.mxu1 %v793_v32 }
  0x30   : > { %453 = vmatpush1.bf16.msra.mxu1 %v795_v33 }
  0x31   : > { %454 = vmatprep.subr.bf16.mxu1 %v796_v34 }
  0x34   : > { %455 = vmatpush1.bf16.msra.mxu1 %v798_v35 }
  0x35   : > { %456 = vmatprep.subr.bf16.mxu1 %v799_v36 }
  0x38   : > { %457 = vmatpush1.bf16.msra.mxu1 %v801_v37 }
  0x39   : > { %458 = vmatprep.subr.bf16.mxu1 %v802_v38 }
  0x3c   : > { %459 = vmatpush1.bf16.msra.mxu1 %v804_v39 }
  0x3d   : > { %460 = vmatprep.subr.bf16.mxu1 %v805_v40 }
  0x40   : > { %461 = vmatpush1.bf16.msra.mxu1 %v807_v41 }
  0x41   : > { %462 = vmatprep.subr.bf16.mxu1 %v810_v42 }
  0x44   : > { %463 = vmatpush1.bf16.msra.mxu1 %v812_v43 }
  0x47   : > { %465 = vmatmul.mubr.bf16.vlgmr.msra.gmra.mrb[0].mxu1 %v220_v45 }
  0xe9   : > { %v507_v46 = vpop.f32.mrb[0].mxu0 }
  0xea   : > { %v509_v47 = vpop.f32.mrb[1].mxu0 }
  0xeb   : > { %v511_v48 = vpop.f32.mrb[2].mxu0 }
  0xec   : > { %v512_v49 = vpop.f32.mrb[3].mxu0 }
 0x11a   : > { %v466_v50 = vpop.f32.mrb[0].mxu1 }
 0x11b   : > { %v508_v51 = vadd.f32 %v507_v46, %v466_v50  ;;  %v468_v52 = vpop.f32.mrb[1].mxu1 }
 0x11c   : > { %v510_v53 = vadd.f32 %v509_v47, %v468_v52  ;;  %v470_v54 = vpop.f32.mrb[2].mxu1 }
 0x11d   : > { %v515_v55 = vrot.slane %v508_v51, 4  ;;  %v552_v56 = vmul.f32 %v508_v51, %v508_v51  ;;  %v471_v57 = vpop.f32.mrb[3].mxu1 }
 0x11e   : > { %v521_v58 = vrot.slane %v510_v53, 4  ;;  %v553_v59 = vmul.f32 %v510_v53, %v510_v53 }
 0x11f   : > { %v516_v60 = vadd.f32 %v515_v55, %v508_v51  ;;  %v554_v61 = vrot.slane %v552_v56, 4 }
 0x120   : > { %v522_v62 = vadd.f32 %v521_v58, %v510_v53  ;;  %v560_v2 = vrot.slane %v553_v59, 4 }
 0x121   : > { %v517_v3 = vrot.slane %v516_v60, 2  ;;  %v555_v4 = vadd.f32 %v554_v61, %v552_v56 }
 0x122   : > { %v523_v5 = vrot.slane %v522_v62, 2  ;;  %v561_v6 = vadd.f32 %v560_v2, %v553_v59 }
 0x123   : > { %v518_v8 = vadd.f32 %v517_v3, %v516_v60  ;;  %v556_v9 = vrot.slane %v555_v4, 2 }
 0x124   : > { %v524_v10 = vadd.f32 %v523_v5, %v522_v62  ;;  %v562_v13 = vrot.slane %v561_v6, 2 }
 0x125   : > { %v519_v14 = vrot.slane %v518_v8, 1  ;;  %v557_v15 = vadd.f32 %v556_v9, %v555_v4 }
 0x126   : > { %v525_v16 = vrot.slane %v524_v10, 1  ;;  %v563_v17 = vadd.f32 %v562_v13, %v561_v6 }
 0x127   : > { %v520_v18 = vadd.f32 %v519_v14, %v518_v8  ;;  %v558_v19 = vrot.slane %v557_v15, 1 }
 0x128   : > { %v526_v20 = vadd.f32 %v525_v16, %v524_v10  ;;  %v564_v22 = vrot.slane %v563_v17, 1 }
 0x129   : > { %v559_v23 = vadd.f32 %v558_v19, %v557_v15 }
 0x12a   : > { %v529_v24 = vcombine.low %v520_v18, %v526_v20  ;;  %v565_v25 = vadd.f32 %v564_v22, %v563_v17 }
 0x12c   : > { %v536_v26 = vrot.slane %v529_v24, %v535_v21  ;;  %v568_v27 = vcombine.low %v559_v23, %v565_v25 }
 0x12e   : > { %v543_v28 = vrot.slane %v536_v26, %v535_v21  ;;  %v575_v29 = vrot.slane %v568_v27, %v535_v21 }
 0x130   : > { %v545_v31 = vadd.f32 %v543_v28, %v514_v1  ;;  %v582_v32 = vrot.slane %v575_v29, %v535_v21 }
 0x132   : > { %550 = vst.msk [vmem:[%s901_s29] sm:$0x3] %vm894_vm0, %v545_v31  ;;  %v584_v33 = vadd.f32 %v582_v32, %v551_v30 }
 0x134   : > { %585 = vst.msk [vmem:[%s906_s5] sm:$0x3] %vm894_vm0, %v584_v33 }
 0x135 PF: > { %s14_s14 = sadd.s32 1, %s835_s14   ;;  %s1030_s12 = smov %s831_s13 }
 0x136   : > { %p11_p5 = scmp.ge.s32.totalorder %s14_s14, 4   ;;  %s1031_s13 = smov %s1033_s15 }
 0x138   :  { %13 = sbr.rel (!%p11_p5) target bundleno = 2 (0x2), region = 74 }

// kernel: landmark_encoder.3
= control target key start
LH: loop header
LB: loop body
LE: loop exit
PB: predicated region body
PF: predicated region fallthrough
CT: control target
= control target key end

     0   :  { %12 = vsyncpa [#allocation3], 0  ;;  %s3051_s0 = inlined_call_operand.vmem [shape: f32[2,8,262], index: 0, kind: input, shape index: {}]   ;;  %s3052_s1 = inlined_call_operand.vmem [shape: bf16[262,256], index: 1, kind: input, shape index: {}]   ;;  %s3053_s2 = inlined_call_operand.vmem [shape: f32[3,256], index: 2, kind: input, shape index: {}]   ;;  %s3054_s3 = inlined_call_operand.vmem [shape: f32[1,512], index: 3, kind: input, shape index: {}]   ;;  %s3055_s4 = inlined_call_operand.vmem [shape: f32[2,1,256], index: 4, kind: input, shape index: {}]   ;;  %s3056_s5 = inlined_call_operand.vmem [shape: bf16[256,512], index: 5, kind: input, shape index: {}]   ;;  %s3057_s6 = inlined_call_operand.vmem [shape: bf16[512,256], index: 6, kind: input, shape index: {}]   ;;  %s3058_s7 = inlined_call_operand.hbm [shape: bf16[2,8,256], index: 7, kind: output, shape index: {}]  }
   0x1   :  { %14 = vsyncpa [#allocation3 + $0x1], 0  ;;  %s2392_s24 = smov 0   ;;  %s2394_s25 = smov 0  }
   0x2   :  { %s2396_s26 = smov 0   ;;  %s2398_s27 = smov 0  }
   0x3   :  { %s2400_s28 = smov 0   ;;  %s2402_s29 = smov 0  }
   0x4 LB: > { %s1771_s30 = sadd.s32 4294967295, %s2348_s29   ;;  %s1772_s8 = sadd.s32 4294967294, %s2348_s29   ;;  %s2348_s29 = sphi %s2402_s29, %s20_s29   ;;  %s2344_s28 = sphi %s2400_s28, %s3065_s28   ;;  %s2340_s27 = sphi %s2398_s27, %s3064_s27   ;;  %s2336_s26 = sphi %s2396_s26, %s3063_s26   ;;  %s2332_s25 = sphi %s2394_s25, %s3062_s25   ;;  %s2328_s24 = sphi %s2392_s24, %s3061_s24  }
   0x5   : > { %s32_s9 = sadd.s32 1, %s2344_s28  ;;  %s200_s10 = sadd.s32 1, %s2336_s26 }
   0x6   : > { %p34_p0 = scmp.ge.s32.totalorder %s32_s9, 2  ;;  %p210_p1 = scmp.ne.s32.totalorder %s2336_s26, %s2332_s25 }
   0x7   : > { %p211_p2 = scmp.eq.s32.totalorder %s1771_s30, 1  ;;  %p216_p3 = scmp.ne.s32.totalorder %s2332_s25, %s2328_s24 }
   0x8   : > { %s3067_s9 = smov (%p34_p0, %s32_s9), 0  ;;  %p217_p5 = scmp.eq.s32.totalorder %s1772_s8, 1 }
   0x9   : > { %p2432_p4 = por %p211_p2, %p210_p1  ;;  %s195_s12 = ssub.s32 %s2344_s28, %s3067_s9 }
   0xa   : > { %p1775_p6 = scmp.ge.s32.totalorder %s2348_s29, 1  ;;  %p198_p7 = scmp.eq.s32.totalorder %s195_s12, 0 }
   0xb   : > { %p2439_p8 = por %p217_p5, %p216_p3  ;;  %p269_p9 = scmp.lt.s32.totalorder %s2348_s29, 3 }
   0xc   : > { %s2445_s14 = scalar_select %p198_p7, %s2336_s26, %s200_s10  }
   0xd   : > { %p270_p10 = pnand %p1775_p6, %p269_p9 }
   0xe   : > { %v2020_v0 = vld [vmem:[%s3052_s1 + $0x4] ss:$8 sps:$4 sm:$0xff] (!%p270_p10)   ;;  %v2022_v1 = vld [vmem:[%s3052_s1] ss:$8 sps:$4 sm:$0xff] (!%p270_p10)   ;;  %v2350_v2 = vmov (!%p270_p10), 0   ;;  %p309_p11 = scmp.lt.s32.totalorder (!%p270_p10), %s2340_s27, 1 }
   0xf   : > { %273 = sbr.rel (%p270_p10) target bundleno = 846 (0x34e), region = 48  ;;  %616 = vmatprep.mubr.bf16.mxu0 (!%p270_p10), %v2350_v2  ;;  %543 = vmatprep.subr.bf16.mxu1 (!%p270_p10), %v2020_v0  ;;  %v2023_v3 = vld [vmem:[%s3052_s1 + $0x14] ss:$8 sps:$4 sm:$0xff] (!%p270_p10)   ;;  %v2025_v4 = vld [vmem:[%s3052_s1 + $0x10] ss:$8 sps:$4 sm:$0xff] (!%p270_p10)   ;;  %vm536_vm0 = vcmask (!%p270_p10), 1042432  }
  0x10   : > { %544 = vmatpush1.bf16.msra.mxu1 (!%p270_p10), %v2022_v1  ;;  %v2026_v5 = vld [vmem:[%s3052_s1 + $0x24] ss:$8 sps:$4 sm:$0xff] (!%p270_p10)   ;;  %v2028_v6 = vld [vmem:[%s3052_s1 + $0x20] ss:$8 sps:$4 sm:$0xff] (!%p270_p10)   ;;  %v2029_v7 = vld [vmem:[%s3052_s1 + $0x34] ss:$8 sps:$4 sm:$0xff] (!%p270_p10)  }
  0x11   : > { %545 = vmatprep.subr.bf16.mxu1 (!%p270_p10), %v2023_v3  ;;  %v2031_v8 = vld [vmem:[%s3052_s1 + $0x30] ss:$8 sps:$4 sm:$0xff] (!%p270_p10)   ;;  %v2032_v9 = vld [vmem:[%s3052_s1 + $0x44] ss:$8 sps:$4 sm:$0xff] (!%p270_p10)   ;;  %v2034_v10 = vld [vmem:[%s3052_s1 + $0x40] ss:$8 sps:$4 sm:$0xff] (!%p270_p10)  }
  0x12   : > { %v2035_v11 = vld [vmem:[%s3052_s1 + $0x54] ss:$8 sps:$4 sm:$0xff] (!%p270_p10)   ;;  %v2037_v12 = vld [vmem:[%s3052_s1 + $0x50] ss:$8 sps:$4 sm:$0xff] (!%p270_p10)   ;;  %v2038_v13 = vld [vmem:[%s3052_s1 + $0x64] ss:$8 sps:$4 sm:$0xff] (!%p270_p10)  }
  0x13   : > { %v366_v14 = vld [vmem:[%s3052_s1 + $0x100] sm:$0x77] (!%p270_p10)  ;;  %v2041_v23 = vld [vmem:[%s3052_s1 + $0x74] ss:$8 sps:$4 sm:$0xff] (!%p270_p10)   ;;  %vm532_vm1 = vcmask (!%p270_p10), 48128   ;;  %s306_s22 = sand.u32 (!%p270_p10), 1, %s2332_s25  }
  0x14   : > { %546 = vmatpush1.bf16.msra.mxu1 (!%p270_p10), %v2025_v4  ;;  %v1814_v15 = vcombine.high (!%p270_p10), %v366_v14, %v366_v14  ;;  %v1813_v16 = vcombine.low (!%p270_p10), %v366_v14, %v366_v14  ;;  %v2040_v19 = vld [vmem:[%s3052_s1 + $0x60] ss:$8 sps:$4 sm:$0xff] (!%p270_p10)   ;;  %v2043_v24 = vld [vmem:[%s3052_s1 + $0x70] ss:$8 sps:$4 sm:$0xff] (!%p270_p10)   ;;  %v2044_v25 = vld [vmem:[%s3052_s1 + $0x84] ss:$8 sps:$4 sm:$0xff] (!%p270_p10)  }
  0x15   : > { %547 = vmatprep.subr.bf16.mxu1 (!%p270_p10), %v2026_v5  ;;  %v2046_v26 = vld [vmem:[%s3052_s1 + $0x80] ss:$8 sps:$4 sm:$0xff] (!%p270_p10)   ;;  %v2047_v27 = vld [vmem:[%s3052_s1 + $0x94] ss:$8 sps:$4 sm:$0xff] (!%p270_p10)   ;;  %v2049_v28 = vld [vmem:[%s3052_s1 + $0x90] ss:$8 sps:$4 sm:$0xff] (!%p270_p10)  }
  0x16   : > { %s2470_s16 = scalar_select %p309_p11, %s2340_s27, 1  ;;  %1815 = vmatprep.subr.msk.bf16.mxu0 %vm536_vm0, %v1814_v15  ;;  %v538_v20 = vsel %vm536_vm0, %v1813_v16, 0  ;;  %v2050_v29 = vld [vmem:[%s3052_s1 + $0xa4] ss:$8 sps:$4 sm:$0xff]   ;;  %v2052_v30 = vld [vmem:[%s3052_s1 + $0xa0] ss:$8 sps:$4 sm:$0xff]  }
  0x17   : > { %585 = vmatpush1.bf16.msra.mxu0 %v538_v20  ;;  %v2053_v31 = vld [vmem:[%s3052_s1 + $0xb4] ss:$8 sps:$4 sm:$0xff]   ;;  %v2055_v32 = vld [vmem:[%s3052_s1 + $0xb0] ss:$8 sps:$4 sm:$0xff]   ;;  %v2056_v33 = vld [vmem:[%s3052_s1 + $0xc4] ss:$8 sps:$4 sm:$0xff]  }
  0x18   : > { %548 = vmatpush1.bf16.msra.mxu1 %v2028_v6  ;;  %s1963_s21 = smul.u32 24, %s2470_s16  ;;  %v2058_v34 = vld [vmem:[%s3052_s1 + $0xc0] ss:$8 sps:$4 sm:$0xff]   ;;  %v2059_v35 = vld [vmem:[%s3052_s1 + $0xd4] ss:$8 sps:$4 sm:$0xff]   ;;  %s1778_s17 = sshll.u32 %s2470_s16, 1 }
  0x19   : > { %549 = vmatprep.subr.bf16.mxu1 %v2029_v7  ;;  %v2061_v36 = vld [vmem:[%s3052_s1 + $0xd0] ss:$8 sps:$4 sm:$0xff]   ;;  %v2062_v37 = vld [vmem:[%s3052_s1 + $0xe4] ss:$8 sps:$4 sm:$0xff]   ;;  %v2064_v38 = vld [vmem:[%s3052_s1 + $0xe0] ss:$8 sps:$4 sm:$0xff]   ;;  %s321_s20 = scalar_lea.vmem %s3055_s4, %s1778_s17 }
  0x1a   : > { %s2488_s15 = scalar_lea.vmem %s3051_s0, %s1963_s21  ;;  %v2067_v39 = vld [vmem:[%s3052_s1 + $0xf4] ss:$8 sps:$4 sm:$0xff]   ;;  %v2069_v40 = vld [vmem:[%s3052_s1 + $0xf0] ss:$8 sps:$4 sm:$0xff]   ;;  %v2174_v16 = vld [vmem:[%s3057_s6 + $0x24] ss:$8 sps:$4 sm:$0xff]  }
  0x1b   : > { %v330_v17 = vld [vmem:[%s2488_s15 + $0x10] sm:$0xff]  ;;  %v329_v18 = vld [vmem:[%s2488_s15 + $0x8] sm:$0xff]  ;;  %v328_v41 = vld [vmem:[%s2488_s15] sm:$0xff]  ;;  %s1776_s23 = sshll.u32 %s306_s22, 3  ;;  %s1954_s16 = sshll.u32 %s2340_s27, 7 }
  0x1c   : > { %550 = vmatpush1.bf16.msra.mxu1 %v2031_v8  ;;  %v333_v21 = vpack.c.bf16 %v330_v17, %v330_v17  ;;  %v332_v22 = vpack.c.bf16 %v329_v18, %v329_v18  ;;  %v2072_v42 = vld [vmem:[%s3056_s5 + $0x4] ss:$16 sps:$4 sm:$0xff]   ;;  %v2070_v43 = vld [vmem:[%s3056_s5] ss:$16 sps:$4 sm:$0xff]   ;;  %v331_v44 = vpack.c.bf16 %v328_v41, %v328_v41  ;;  %s308_s21 = scalar_lea.vmem [#allocation2], %s1776_s23  ;;  %s3004_s10 = scalar_lea.hbm %s3058_s7, %s1954_s16 }
  0x1d   : > { %551 = vmatprep.subr.bf16.mxu1 %v2032_v9  ;;  %v2075_v45 = vld [vmem:[%s3056_s5 + $0x24] ss:$16 sps:$4 sm:$0xff]   ;;  %v2073_v46 = vld [vmem:[%s3056_s5 + $0x20] ss:$16 sps:$4 sm:$0xff]   ;;  %s1680_s30 = sshll.u32 %s308_s21, 4  ;;  %s1664_s12 = scalar_lea.sflag [#allocation3], %s306_s22  ;;  %s3006_s30 = int_to_ptr.vmem [resolvable:$true] %s1680_s30 }
  0x1e   : > { %575 = vmatprep.mubr.bf16.mxu1 %v332_v22  ;;  %1816 = vmatmul.mubr.msk.bf16.vlgmr.msra.gmra.mrb[0].mxu0 %vm532_vm1, %v333_v21  ;;  %v2078_v47 = vld [vmem:[%s3056_s5 + $0x44] ss:$16 sps:$4 sm:$0xff]   ;;  %v2076_v48 = vld [vmem:[%s3056_s5 + $0x40] ss:$16 sps:$4 sm:$0xff]   ;;  %s2270_s17 = scalar_lea.vmem %s3006_s30, 128  ;;  %s2351_s27 = smov [#allocation2]  }
  0x1f   : > { %v2081_v49 = vld [vmem:[%s3056_s5 + $0x64] ss:$16 sps:$4 sm:$0xff]   ;;  %v2079_v50 = vld [vmem:[%s3056_s5 + $0x60] ss:$16 sps:$4 sm:$0xff]   ;;  %p2271_p12 = scmp.ne.s32.totalorder %s3006_s30, %s2270_s17  ;;  %s2274_s18 = sshll.u32 %s2351_s27, 4  ;;  %s2275_s18 = int_to_ptr.vmem [resolvable:$false] %s2274_s18 }
  0x20   : > { %552 = vmatpush1.bf16.msra.mxu1 %v2034_v10  ;;  %v2084_v51 = vld [vmem:[%s3056_s5 + $0x84] ss:$16 sps:$4 sm:$0xff]   ;;  %v2082_v52 = vld [vmem:[%s3056_s5 + $0x80] ss:$16 sps:$4 sm:$0xff]   ;;  %s2276_s19 = scalar_lea.vmem %s2275_s18, 256  ;;  %p2277_p1 = scmp.lt.s32.totalorder %s3006_s30, %s2275_s18 }
  0x21   : > { %553 = vmatprep.subr.bf16.mxu1 %v2035_v11  ;;  %v2087_v53 = vld [vmem:[%s3056_s5 + $0xa4] ss:$16 sps:$4 sm:$0xff]   ;;  %v2085_v54 = vld [vmem:[%s3056_s5 + $0xa0] ss:$16 sps:$4 sm:$0xff]   ;;  %v2120_v11 = vld [vmem:[%s3056_s5 + $0xc] ss:$16 sps:$4 sm:$0xff]   ;;  %p2272_p13 = pnand %p2271_p12, %p2432_p4  ;;  %p2278_p2 = scmp.lt.s32.totalorder %s2276_s19, %s2270_s17 }
  0x22   : > { %v2090_v55 = vld [vmem:[%s3056_s5 + $0xc4] ss:$16 sps:$4 sm:$0xff]   ;;  %v2088_v56 = vld [vmem:[%s3056_s5 + $0xc0] ss:$16 sps:$4 sm:$0xff]  }
  0x23   : > { %v2093_v57 = vld [vmem:[%s3056_s5 + $0xe4] ss:$16 sps:$4 sm:$0xff]   ;;  %v2091_v58 = vld [vmem:[%s3056_s5 + $0xe0] ss:$16 sps:$4 sm:$0xff]   ;;  %p2273_p0 = pneg %p2272_p13  ;;  %p2279_p3 = por %p2278_p2, %p2277_p1 }
  0x24   : > { %554 = vmatpush1.bf16.msra.mxu1 %v2037_v12  ;;  %v2096_v59 = vld [vmem:[%s3056_s5 + $0x104] ss:$16 sps:$4 sm:$0xff]   ;;  %v2094_v60 = vld [vmem:[%s3056_s5 + $0x100] ss:$16 sps:$4 sm:$0xff]  }
  0x25   : > { %555 = vmatprep.subr.bf16.mxu1 %v2038_v13  ;;  %v2099_v61 = vld [vmem:[%s3056_s5 + $0x124] ss:$16 sps:$4 sm:$0xff]   ;;  %v2097_v62 = vld [vmem:[%s3056_s5 + $0x120] ss:$16 sps:$4 sm:$0xff]   ;;  %p2280_p5 = pnand %p2279_p3, %p2273_p0 }
  0x26   : > { %v2102_v63 = vld [vmem:[%s3056_s5 + $0x144] ss:$16 sps:$4 sm:$0xff]   ;;  %v2100_v0 = vld [vmem:[%s3056_s5 + $0x140] ss:$16 sps:$4 sm:$0xff]  }
  0x27   : > { %v2105_v1 = vld [vmem:[%s3056_s5 + $0x164] ss:$16 sps:$4 sm:$0xff]   ;;  %v2103_v2 = vld [vmem:[%s3056_s5 + $0x160] ss:$16 sps:$4 sm:$0xff]  }
  0x28   : > { %556 = vmatpush1.bf16.msra.mxu1 %v2040_v19  ;;  %v2108_v3 = vld [vmem:[%s3056_s5 + $0x184] ss:$16 sps:$4 sm:$0xff]   ;;  %v2106_v4 = vld [vmem:[%s3056_s5 + $0x180] ss:$16 sps:$4 sm:$0xff]  }
  0x29   : > { %557 = vmatprep.subr.bf16.mxu1 %v2041_v23  ;;  %v2111_v5 = vld [vmem:[%s3056_s5 + $0x1a4] ss:$16 sps:$4 sm:$0xff]   ;;  %v2109_v6 = vld [vmem:[%s3056_s5 + $0x1a0] ss:$16 sps:$4 sm:$0xff]  }
  0x2a   : > { %v2114_v7 = vld [vmem:[%s3056_s5 + $0x1c4] ss:$16 sps:$4 sm:$0xff]   ;;  %v2112_v8 = vld [vmem:[%s3056_s5 + $0x1c0] ss:$16 sps:$4 sm:$0xff]  }
  0x2b   : > { %v2117_v9 = vld [vmem:[%s3056_s5 + $0x1e4] ss:$16 sps:$4 sm:$0xff]   ;;  %v2115_v10 = vld [vmem:[%s3056_s5 + $0x1e0] ss:$16 sps:$4 sm:$0xff]  }
  0x2c   : > { %558 = vmatpush1.bf16.msra.mxu1 %v2043_v24  ;;  %v2166_v12 = vld [vmem:[%s3057_s6] ss:$8 sps:$4 sm:$0xff]   ;;  %v2168_v13 = vld [vmem:[%s3057_s6 + $0x4] ss:$8 sps:$4 sm:$0xff]   ;;  %v2171_v14 = vld [vmem:[%s3057_s6 + $0x14] ss:$8 sps:$4 sm:$0xff]  }
  0x2d   : > { %559 = vmatprep.subr.bf16.mxu1 %v2044_v25  ;;  %1544 = vmatprep.subr.bf16.mxu0 %v2168_v13  ;;  %v2169_v15 = vld [vmem:[%s3057_s6 + $0x10] ss:$8 sps:$4 sm:$0xff]   ;;  %v2172_v17 = vld [vmem:[%s3057_s6 + $0x20] ss:$8 sps:$4 sm:$0xff]   ;;  %v2177_v18 = vld [vmem:[%s3057_s6 + $0x34] ss:$8 sps:$4 sm:$0xff]  }
  0x2e   : > { %1545 = vmatpush1.bf16.msra.mxu0 %v2166_v12  ;;  %v2175_v19 = vld [vmem:[%s3057_s6 + $0x30] ss:$8 sps:$4 sm:$0xff]   ;;  %v2180_v20 = vld [vmem:[%s3057_s6 + $0x44] ss:$8 sps:$4 sm:$0xff]   ;;  %v2178_v23 = vld [vmem:[%s3057_s6 + $0x40] ss:$8 sps:$4 sm:$0xff]  }
  0x2f   : > { %1546 = vmatprep.subr.bf16.mxu0 %v2171_v14  ;;  %v2183_v25 = vld [vmem:[%s3057_s6 + $0x54] ss:$8 sps:$4 sm:$0xff]   ;;  %v2133_v12 = vld [vmem:[%s3056_s5 + $0xa8] ss:$16 sps:$4 sm:$0xff]  }
  0x30   : > { %560 = vmatpush1.bf16.msra.mxu1 %v2046_v26  ;;  %v2138_v13 = vld [vmem:[%s3056_s5 + $0xcc] ss:$16 sps:$4 sm:$0xff]   ;;  %v2136_v14 = vld [vmem:[%s3056_s5 + $0xc8] ss:$16 sps:$4 sm:$0xff]  }
  0x31   : > { %561 = vmatprep.subr.bf16.mxu1 %v2047_v27  ;;  %v2181_v27 = vld [vmem:[%s3057_s6 + $0x50] ss:$8 sps:$4 sm:$0xff]  }
  0x32   : > { %1547 = vmatpush1.bf16.msra.mxu0 %v2169_v15  ;;  %v2141_v15 = vld [vmem:[%s3056_s5 + $0xec] ss:$16 sps:$4 sm:$0xff]  }
  0x33   : > { %1548 = vmatprep.subr.bf16.mxu0 %v2174_v16  ;;  %v2139_v16 = vld [vmem:[%s3056_s5 + $0xe8] ss:$16 sps:$4 sm:$0xff]  }
  0x34   : > { %562 = vmatpush1.bf16.msra.mxu1 %v2049_v28  ;;  %v2186_v28 = vld [vmem:[%s3057_s6 + $0x64] ss:$8 sps:$4 sm:$0xff]  }
  0x35   : > { %563 = vmatprep.subr.bf16.mxu1 %v2050_v29  ;;  %v2184_v29 = vld [vmem:[%s3057_s6 + $0x60] ss:$8 sps:$4 sm:$0xff]  }
  0x36   : > { %1549 = vmatpush1.bf16.msra.mxu0 %v2172_v17  ;;  %v2144_v17 = vld [vmem:[%s3056_s5 + $0x10c] ss:$16 sps:$4 sm:$0xff]  }
  0x37   : > { %1550 = vmatprep.subr.bf16.mxu0 %v2177_v18  ;;  %v2142_v18 = vld [vmem:[%s3056_s5 + $0x108] ss:$16 sps:$4 sm:$0xff]  }
  0x38   : > { %564 = vmatpush1.bf16.msra.mxu1 %v2052_v30  ;;  %v2189_v30 = vld [vmem:[%s3057_s6 + $0x74] ss:$8 sps:$4 sm:$0xff]  }
  0x39   : > { %565 = vmatprep.subr.bf16.mxu1 %v2053_v31  ;;  %v2187_v31 = vld [vmem:[%s3057_s6 + $0x70] ss:$8 sps:$4 sm:$0xff]  }
  0x3a   : > { %1551 = vmatpush1.bf16.msra.mxu0 %v2175_v19  ;;  %v2147_v19 = vld [vmem:[%s3056_s5 + $0x12c] ss:$16 sps:$4 sm:$0xff]  }
  0x3b   : > { %1552 = vmatprep.subr.bf16.mxu0 %v2180_v20  ;;  %v2145_v20 = vld [vmem:[%s3056_s5 + $0x128] ss:$16 sps:$4 sm:$0xff]  }
  0x3c   : > { %566 = vmatpush1.bf16.msra.mxu1 %v2055_v32  ;;  %v2192_v32 = vld [vmem:[%s3057_s6 + $0x84] ss:$8 sps:$4 sm:$0xff]  }
  0x3d   : > { %567 = vmatprep.subr.bf16.mxu1 %v2056_v33  ;;  %v2190_v33 = vld [vmem:[%s3057_s6 + $0x80] ss:$8 sps:$4 sm:$0xff]  }
  0x3e   : > { %1553 = vmatpush1.bf16.msra.mxu0 %v2178_v23  ;;  %v2153_v23 = vld [vmem:[%s3056_s5 + $0x16c] ss:$16 sps:$4 sm:$0xff]  }
  0x3f   : > { %1554 = vmatprep.subr.bf16.mxu0 %v2183_v25  ;;  %v2156_v25 = vld [vmem:[%s3056_s5 + $0x18c] ss:$16 sps:$4 sm:$0xff]  }
  0x40   : > { %568 = vmatpush1.bf16.msra.mxu1 %v2058_v34  ;;  %v2195_v34 = vld [vmem:[%s3057_s6 + $0x94] ss:$8 sps:$4 sm:$0xff]  }
  0x41   : > { %569 = vmatprep.subr.bf16.mxu1 %v2059_v35  ;;  %v2193_v35 = vld [vmem:[%s3057_s6 + $0x90] ss:$8 sps:$4 sm:$0xff]  }
  0x42   : > { %1555 = vmatpush1.bf16.msra.mxu0 %v2181_v27  ;;  %v2159_v27 = vld [vmem:[%s3056_s5 + $0x1ac] ss:$16 sps:$4 sm:$0xff]  }
  0x43   : > { %1556 = vmatprep.subr.bf16.mxu0 %v2186_v28  ;;  %v2157_v28 = vld [vmem:[%s3056_s5 + $0x1a8] ss:$16 sps:$4 sm:$0xff]  }
  0x44   : > { %570 = vmatpush1.bf16.msra.mxu1 %v2061_v36  ;;  %v2198_v36 = vld [vmem:[%s3057_s6 + $0xa4] ss:$8 sps:$4 sm:$0xff]  }
  0x45   : > { %571 = vmatprep.subr.bf16.mxu1 %v2062_v37  ;;  %v2196_v37 = vld [vmem:[%s3057_s6 + $0xa0] ss:$8 sps:$4 sm:$0xff]  }
  0x46   : > { %1557 = vmatpush1.bf16.msra.mxu0 %v2184_v29  ;;  %v2162_v29 = vld [vmem:[%s3056_s5 + $0x1cc] ss:$16 sps:$4 sm:$0xff]  }
  0x47   : > { %1558 = vmatprep.subr.bf16.mxu0 %v2189_v30  ;;  %v2160_v30 = vld [vmem:[%s3056_s5 + $0x1c8] ss:$16 sps:$4 sm:$0xff]  }
  0x48   : > { %572 = vmatpush1.bf16.msra.mxu1 %v2064_v38  ;;  %v626_v38 = vlaneseq }
  0x49   : > { %573 = vmatprep.subr.bf16.mxu1 %v2067_v39  ;;  %v2201_v39 = vld [vmem:[%s3057_s6 + $0xb4] ss:$8 sps:$4 sm:$0xff]  }
  0x4a   : > { %1559 = vmatpush1.bf16.msra.mxu0 %v2187_v31  ;;  %v2730_v41 = vshrl.u32 %v626_v38, 7  ;;  %v2165_v31 = vld [vmem:[%s3056_s5 + $0x1ec] ss:$16 sps:$4 sm:$0xff]   ;;  %v2883_v38 = vld [vmem:[%s3054_s3] sm:$0xf] }
  0x4b   : > { %1560 = vmatprep.subr.bf16.mxu0 %v2192_v32  ;;  %v2163_v32 = vld [vmem:[%s3056_s5 + $0x1e8] ss:$16 sps:$4 sm:$0xff]  }
  0x4c   : > { %574 = vmatpush1.bf16.msra.mxu1 %v2069_v40  ;;  %v2199_v40 = vld [vmem:[%s3057_s6 + $0xb0] ss:$8 sps:$4 sm:$0xff]  }
  0x4d   : > { %1059 = vmatprep.subr.bf16.mxu1 %v2072_v42  ;;  %v2204_v42 = vld [vmem:[%s3057_s6 + $0xc4] ss:$8 sps:$4 sm:$0xff]  }
  0x4e   : > { %1561 = vmatpush1.bf16.msra.mxu0 %v2190_v33  ;;  %v2210_v33 = vld [vmem:[%s3057_s6 + $0xe4] ss:$8 sps:$4 sm:$0xff]  }
  0x4f   : > { %576 = vmatmul.mubr.bf16.vlgmr.msra.gmra.mrb[0].mxu1 %v331_v44  ;;  %1562 = vmatprep.subr.bf16.mxu0 %v2195_v34  ;;  %v2739_v44 = vsub.s32 0, %v2730_v41  ;;  %v2208_v34 = vld [vmem:[%s3057_s6 + $0xe0] ss:$8 sps:$4 sm:$0xff]  }
  0x50   : > { %1060 = vmatpush1.bf16.msra.mxu1 %v2070_v43  ;;  %v2202_v43 = vld [vmem:[%s3057_s6 + $0xc0] ss:$8 sps:$4 sm:$0xff]  }
  0x51   : > { %1061 = vmatprep.subr.bf16.mxu1 %v2075_v45  ;;  %v2207_v45 = vld [vmem:[%s3057_s6 + $0xd4] ss:$8 sps:$4 sm:$0xff]  }
  0x52   : > { %1563 = vmatpush1.bf16.msra.mxu0 %v2193_v35  ;;  %v2213_v35 = vld [vmem:[%s3057_s6 + $0xf4] ss:$8 sps:$4 sm:$0xff]  }
  0x53   : > { %1564 = vmatprep.subr.bf16.mxu0 %v2198_v36  ;;  %v2211_v36 = vld [vmem:[%s3057_s6 + $0xf0] ss:$8 sps:$4 sm:$0xff]  }
  0x54   : > { %1062 = vmatpush1.bf16.msra.mxu1 %v2073_v46  ;;  %v323_v46 = vld [vmem:[%s3053_s2] ss:$4 sm:$0x3] }
  0x55   : > { %1063 = vmatprep.subr.bf16.mxu1 %v2078_v47  ;;  %v2748_v47 = vsub.s32 1, %v2730_v41 }
  0x56   : > { %1565 = vmatpush1.bf16.msra.mxu0 %v2196_v37  ;;  %v2216_v37 = vld [vmem:[%s3057_s6 + $0x104] ss:$8 sps:$4 sm:$0xff]  }
  0x57   : > { %1566 = vmatprep.subr.bf16.mxu0 %v2201_v39  ;;  %v722_v39 = vrot.slane %v2883_v38, %v2739_v44 }
  0x58   : > { %1064 = vmatpush1.bf16.msra.mxu1 %v2076_v48  ;;  %v1779_v48 = vld [vmem:[%s3053_s2 + $0x1] ss:$4 sm:$0x3] }
  0x59   : > { %1065 = vmatprep.subr.bf16.mxu1 %v2081_v49  ;;  %v2205_v49 = vld [vmem:[%s3057_s6 + $0xd0] ss:$8 sps:$4 sm:$0xff]  }
  0x5a   : > { %1567 = vmatpush1.bf16.msra.mxu0 %v2199_v40  ;;  %v726_v40 = vrot.slane %v2883_v38, %v2748_v47 }
  0x5b   : > { %1568 = vmatprep.subr.bf16.mxu0 %v2204_v42 }
  0x5c   : > { %1066 = vmatpush1.bf16.msra.mxu1 %v2079_v50  ;;  %v629_v50 = vrot.slane %v323_v46, %v2739_v44 }
  0x5d   : > { %1067 = vmatprep.subr.bf16.mxu1 %v2084_v51 }
  0x5e   : > { %1569 = vmatpush1.bf16.msra.mxu0 %v2202_v43 }
  0x5f   : > { %1570 = vmatprep.subr.bf16.mxu0 %v2207_v45 }
  0x60   : > { %1068 = vmatpush1.bf16.msra.mxu1 %v2082_v52  ;;  %v633_v52 = vrot.slane %v323_v46, %v2748_v47 }
  0x61   : > { %1069 = vmatprep.subr.bf16.mxu1 %v2087_v53 }
  0x62   : > { %1571 = vmatpush1.bf16.msra.mxu0 %v2205_v49 }
  0x63   : > { %1572 = vmatprep.subr.bf16.mxu0 %v2210_v33 }
  0x64   : > { %1070 = vmatpush1.bf16.msra.mxu1 %v2085_v54  ;;  %v642_v54 = vrot.slane %v1779_v48, %v2739_v44 }
  0x65   : > { %1071 = vmatprep.subr.bf16.mxu1 %v2090_v55 }
  0x66   : > { %1573 = vmatpush1.bf16.msra.mxu0 %v2208_v34 }
  0x67   : > { %1574 = vmatprep.subr.bf16.mxu0 %v2213_v35 }
  0x68   : > { %1072 = vmatpush1.bf16.msra.mxu1 %v2088_v56 }
  0x69   : > { %1073 = vmatprep.subr.bf16.mxu1 %v2093_v57  ;;  %v646_v57 = vrot.slane %v1779_v48, %v2748_v47 }
  0x6a   : > { %1575 = vmatpush1.bf16.msra.mxu0 %v2211_v36  ;;  %v1780_v36 = vld [vmem:[%s3053_s2 + $0x2] ss:$4 sm:$0x3] }
  0x6b   : > { %1585 = vmatprep.subr.bf16.mxu0 %v2216_v37  ;;  %v1217_v37 = vrot.slane %v1780_v36, %v2739_v44 }
  0x6c   : > { %1074 = vmatpush1.bf16.msra.mxu1 %v2091_v58 }
  0x6d   : > { %1075 = vmatprep.subr.bf16.mxu1 %v2096_v59 }
  0x70   : > { %1076 = vmatpush1.bf16.msra.mxu1 %v2094_v60 }
  0x71   : > { %1077 = vmatprep.subr.bf16.mxu1 %v2099_v61 }
  0x74   : > { %1078 = vmatpush1.bf16.msra.mxu1 %v2097_v62 }
  0x75   : > { %1079 = vmatprep.subr.bf16.mxu1 %v2102_v63 }
  0x78   : > { %1080 = vmatpush1.bf16.msra.mxu1 %v2100_v0 }
  0x79   : > { %1081 = vmatprep.subr.bf16.mxu1 %v2105_v1  ;;  %v2118_v1 = vld [vmem:[%s3056_s5 + $0x8] ss:$16 sps:$4 sm:$0xff]  }
  0x7c   : > { %1082 = vmatpush1.bf16.msra.mxu1 %v2103_v2 }
  0x7d   : > { %1083 = vmatprep.subr.bf16.mxu1 %v2108_v3  ;;  %v2123_v3 = vld [vmem:[%s3056_s5 + $0x2c] ss:$16 sps:$4 sm:$0xff]  }
  0x80   : > { %1084 = vmatpush1.bf16.msra.mxu1 %v2106_v4  ;;  %v2121_v4 = vld [vmem:[%s3056_s5 + $0x28] ss:$16 sps:$4 sm:$0xff]  }
  0x81   : > { %1085 = vmatprep.subr.bf16.mxu1 %v2111_v5  ;;  %v2126_v5 = vld [vmem:[%s3056_s5 + $0x4c] ss:$16 sps:$4 sm:$0xff]  }
  0x84   : > { %1086 = vmatpush1.bf16.msra.mxu1 %v2109_v6  ;;  %v2124_v6 = vld [vmem:[%s3056_s5 + $0x48] ss:$16 sps:$4 sm:$0xff]  }
  0x85   : > { %1087 = vmatprep.subr.bf16.mxu1 %v2114_v7  ;;  %v2129_v7 = vld [vmem:[%s3056_s5 + $0x6c] ss:$16 sps:$4 sm:$0xff]  }
  0x88   : > { %1088 = vmatpush1.bf16.msra.mxu1 %v2112_v8  ;;  %v2127_v8 = vld [vmem:[%s3056_s5 + $0x68] ss:$16 sps:$4 sm:$0xff]  }
  0x89   : > { %1089 = vmatprep.subr.bf16.mxu1 %v2117_v9  ;;  %v2132_v9 = vld [vmem:[%s3056_s5 + $0x8c] ss:$16 sps:$4 sm:$0xff]  }
  0x8c   : > { %1090 = vmatpush1.bf16.msra.mxu1 %v2115_v10  ;;  %v2130_v10 = vld [vmem:[%s3056_s5 + $0x88] ss:$16 sps:$4 sm:$0xff]  }
  0x8d   : > { %1100 = vmatprep.subr.bf16.mxu1 %v2120_v11  ;;  %v2135_v11 = vld [vmem:[%s3056_s5 + $0xac] ss:$16 sps:$4 sm:$0xff]  }
  0xf1   : > { %v618_v21 = vpop.f32.mrb[0].mxu0 }
  0xf2   : > { %v620_v22 = vpop.f32.mrb[1].mxu0 }
  0xf3   : > { %v622_v24 = vpop.f32.mrb[2].mxu0 }
  0xf4   : > { %v623_v26 = vpop.f32.mrb[3].mxu0  ;;  %v2151_v24 = vld [vmem:[%s3056_s5 + $0x168] ss:$16 sps:$4 sm:$0xff]  }
  0xf5   : > { %v2154_v26 = vld [vmem:[%s3056_s5 + $0x188] ss:$16 sps:$4 sm:$0xff]  }
 0x122   : > { %v577_v51 = vpop.f32.mrb[0].mxu1 }
 0x123   : > { %v619_v53 = vadd.f32 %v618_v21, %v577_v51  ;;  %v579_v55 = vpop.f32.mrb[1].mxu1  ;;  %v2150_v21 = vld [vmem:[%s3056_s5 + $0x14c] ss:$16 sps:$4 sm:$0xff]  }
 0x124   : > { %v621_v56 = vadd.f32 %v620_v22, %v579_v55  ;;  %v581_v58 = vpop.f32.mrb[2].mxu1  ;;  %v2148_v22 = vld [vmem:[%s3056_s5 + $0x148] ss:$16 sps:$4 sm:$0xff]   ;;  %v2219_v55 = vld [vmem:[%s3057_s6 + $0x114] ss:$8 sps:$4 sm:$0xff]  }
 0x125   : > { %v636_v59 = vmul.f32 %v629_v50, %v619_v53  ;;  %v582_v60 = vpop.f32.mrb[3].mxu1  ;;  %v2214_v53 = vld [vmem:[%s3057_s6 + $0x100] ss:$8 sps:$4 sm:$0xff]  }
 0x126   : > { %v637_v61 = vmul.f32 %v633_v52, %v621_v56  ;;  %v2217_v56 = vld [vmem:[%s3057_s6 + $0x110] ss:$8 sps:$4 sm:$0xff]   ;;  %v2220_v58 = vld [vmem:[%s3057_s6 + $0x120] ss:$8 sps:$4 sm:$0xff]  }
 0x127   : > { %v2760_v62 = vadd.f32 %v642_v54, %v636_v59  ;;  %v2225_v59 = vld [vmem:[%s3057_s6 + $0x134] ss:$8 sps:$4 sm:$0xff]   ;;  %v2223_v60 = vld [vmem:[%s3057_s6 + $0x130] ss:$8 sps:$4 sm:$0xff]  }
 0x128   : > { %v2762_v63 = vadd.f32 %v646_v57, %v637_v61  ;;  %v2222_v57 = vld [vmem:[%s3057_s6 + $0x124] ss:$8 sps:$4 sm:$0xff]  }
 0x129   : > { %v2771_v2 = vpack.c.bf16 %v2760_v62, %v2760_v62  ;;  %v2228_v61 = vld [vmem:[%s3057_s6 + $0x144] ss:$8 sps:$4 sm:$0xff]  }
 0x12a   : > { %v652_v0 = vpack.c.bf16 %v2762_v63, %v2762_v63 }
 0x12c   : > { %1091 = vmatprep.mubr.bf16.mxu1 %v652_v0 }
 0x12d   : > { %1092 = vmatmul.mubr.bf16.vlgmr.msra.gmra.mrb[4].mxu1 %v2771_v2 }
 0x12e   : > { %1101 = vmatpush1.bf16.msra.mxu1 %v2118_v1  ;;  %1132 = vmatprep.mubr.bf16.mxu1 %v652_v0  ;;  %v2226_v0 = vld [vmem:[%s3057_s6 + $0x140] ss:$8 sps:$4 sm:$0xff]   ;;  %v2231_v1 = vld [vmem:[%s3057_s6 + $0x154] ss:$8 sps:$4 sm:$0xff]  }
 0x12f   : > { %1102 = vmatprep.subr.bf16.mxu1 %v2123_v3  ;;  %v2234_v3 = vld [vmem:[%s3057_s6 + $0x164] ss:$8 sps:$4 sm:$0xff]  }
 0x132   : > { %1103 = vmatpush1.bf16.msra.mxu1 %v2121_v4  ;;  %v2232_v4 = vld [vmem:[%s3057_s6 + $0x160] ss:$8 sps:$4 sm:$0xff]  }
 0x133   : > { %1104 = vmatprep.subr.bf16.mxu1 %v2126_v5  ;;  %v2237_v5 = vld [vmem:[%s3057_s6 + $0x174] ss:$8 sps:$4 sm:$0xff]  }
 0x136   : > { %1105 = vmatpush1.bf16.msra.mxu1 %v2124_v6  ;;  %v2235_v6 = vld [vmem:[%s3057_s6 + $0x170] ss:$8 sps:$4 sm:$0xff]  }
 0x137   : > { %1106 = vmatprep.subr.bf16.mxu1 %v2129_v7  ;;  %v2240_v7 = vld [vmem:[%s3057_s6 + $0x184] ss:$8 sps:$4 sm:$0xff]  }
 0x13a   : > { %1107 = vmatpush1.bf16.msra.mxu1 %v2127_v8  ;;  %v2238_v8 = vld [vmem:[%s3057_s6 + $0x180] ss:$8 sps:$4 sm:$0xff]  }
 0x13b   : > { %1108 = vmatprep.subr.bf16.mxu1 %v2132_v9  ;;  %v2243_v9 = vld [vmem:[%s3057_s6 + $0x194] ss:$8 sps:$4 sm:$0xff]  }
 0x13e   : > { %1109 = vmatpush1.bf16.msra.mxu1 %v2130_v10  ;;  %v2241_v10 = vld [vmem:[%s3057_s6 + $0x190] ss:$8 sps:$4 sm:$0xff]  }
 0x13f   : > { %1110 = vmatprep.subr.bf16.mxu1 %v2135_v11  ;;  %v2246_v11 = vld [vmem:[%s3057_s6 + $0x1a4] ss:$8 sps:$4 sm:$0xff]  }
 0x142   : > { %1111 = vmatpush1.bf16.msra.mxu1 %v2133_v12  ;;  %v2244_v12 = vld [vmem:[%s3057_s6 + $0x1a0] ss:$8 sps:$4 sm:$0xff]  }
 0x143   : > { %1112 = vmatprep.subr.bf16.mxu1 %v2138_v13  ;;  %v2249_v13 = vld [vmem:[%s3057_s6 + $0x1b4] ss:$8 sps:$4 sm:$0xff]  }
 0x146   : > { %1113 = vmatpush1.bf16.msra.mxu1 %v2136_v14  ;;  %v2247_v14 = vld [vmem:[%s3057_s6 + $0x1b0] ss:$8 sps:$4 sm:$0xff]  }
 0x147   : > { %1114 = vmatprep.subr.bf16.mxu1 %v2141_v15  ;;  %v2252_v15 = vld [vmem:[%s3057_s6 + $0x1c4] ss:$8 sps:$4 sm:$0xff]  }
 0x14a   : > { %1115 = vmatpush1.bf16.msra.mxu1 %v2139_v16  ;;  %v2250_v16 = vld [vmem:[%s3057_s6 + $0x1c0] ss:$8 sps:$4 sm:$0xff]  }
 0x14b   : > { %1116 = vmatprep.subr.bf16.mxu1 %v2144_v17  ;;  %v2255_v17 = vld [vmem:[%s3057_s6 + $0x1d4] ss:$8 sps:$4 sm:$0xff]  }
 0x14e   : > { %1117 = vmatpush1.bf16.msra.mxu1 %v2142_v18  ;;  %v729_v18 = vsub.s32 2, %v2730_v41 }
 0x14f   : > { %1118 = vmatprep.subr.bf16.mxu1 %v2147_v19  ;;  %v2253_v19 = vld [vmem:[%s3057_s6 + $0x1d0] ss:$8 sps:$4 sm:$0xff]  }
 0x152   : > { %1119 = vmatpush1.bf16.msra.mxu1 %v2145_v20  ;;  %v733_v20 = vsub.s32 3, %v2730_v41 }
 0x153   : > { %1120 = vmatprep.subr.bf16.mxu1 %v2150_v21  ;;  %v2258_v21 = vld [vmem:[%s3057_s6 + $0x1e4] ss:$8 sps:$4 sm:$0xff]  }
 0x156   : > { %1121 = vmatpush1.bf16.msra.mxu1 %v2148_v22  ;;  %v730_v22 = vrot.slane %v2883_v38, %v729_v18 }
 0x157   : > { %1122 = vmatprep.subr.bf16.mxu1 %v2153_v23  ;;  %v734_v23 = vrot.slane %v2883_v38, %v733_v20  ;;  %v1221_v38 = vrot.slane %v1780_v36, %v2748_v47 }
 0x15a   : > { %1123 = vmatpush1.bf16.msra.mxu1 %v2151_v24  ;;  %v2256_v24 = vld [vmem:[%s3057_s6 + $0x1e0] ss:$8 sps:$4 sm:$0xff]  }
 0x15b   : > { %1124 = vmatprep.subr.bf16.mxu1 %v2156_v25  ;;  %v2261_v25 = vld [vmem:[%s3057_s6 + $0x1f4] ss:$8 sps:$4 sm:$0xff]  }
 0x15e   : > { %1125 = vmatpush1.bf16.msra.mxu1 %v2154_v26 }
 0x15f   : > { %1126 = vmatprep.subr.bf16.mxu1 %v2159_v27 }
 0x162   : > { %1127 = vmatpush1.bf16.msra.mxu1 %v2157_v28 }
 0x163   : > { %1128 = vmatprep.subr.bf16.mxu1 %v2162_v29 }
 0x166   : > { %1129 = vmatpush1.bf16.msra.mxu1 %v2160_v30  ;;  %v2259_v30 = vld [vmem:[%s3057_s6 + $0x1f0] ss:$8 sps:$4 sm:$0xff]  }
 0x167   : > { %1130 = vmatprep.subr.bf16.mxu1 %v2165_v31 }
 0x16a   : > { %1131 = vmatpush1.bf16.msra.mxu1 %v2163_v32 }
 0x16d   : > { %1133 = vmatmul.mubr.bf16.vlgmr.msra.gmra.mrb[8].mxu1 %v2771_v2  ;;  %v2229_v2 = vld [vmem:[%s3057_s6 + $0x150] ss:$8 sps:$4 sm:$0xff]  }
 0x200   : > { %v1093_v42 = vpop.f32.mrb[4].mxu1 }
 0x201   : > { %v1094_v43 = vadd.f32 %v1093_v42, %v722_v39  ;;  %v1095_v45 = vpop.f32.mrb[5].mxu1 }
 0x202   : > { %v1096_v46 = vadd.f32 %v1095_v45, %v726_v40  ;;  %v1097_v48 = vpop.f32.mrb[6].mxu1 }
 0x203   : > { %v1141_v49 = vmax.f32 %v1094_v43, 0.0  ;;  %v1098_v50 = vpop.f32.mrb[7].mxu1 }
 0x204   : > { %v1142_v51 = vmax.f32 %v1096_v46, 0.0 }
 0x205   : > { %v1145_v54 = vpack.c.bf16 %v1141_v49, %v1141_v49 }
 0x206   : > { %v1146_v52 = vpack.c.bf16 %v1142_v51, %v1142_v51 }
 0x208   : > { %1576 = vmatprep.mubr.bf16.mxu0 %v1146_v52 }
 0x209   : > { %1577 = vmatmul.mubr.bf16.vlgmr.msra.gmra.mrb[4].mxu0 %v1145_v54  ;;  %v1640_v54 = vld [vmem:[%s321_s20] sm:$0x3] }
 0x20a   : > { %1586 = vmatpush1.bf16.msra.mxu0 %v2214_v53 }
 0x20b   : > { %1587 = vmatprep.subr.bf16.mxu0 %v2219_v55  ;;  %v1645_v55 = vrot.slane %v1640_v54, %v2739_v44 }
 0x20e   : > { %1588 = vmatpush1.bf16.msra.mxu0 %v2217_v56 }
 0x20f   : > { %1589 = vmatprep.subr.bf16.mxu0 %v2222_v57  ;;  %v1649_v57 = vrot.slane %v1640_v54, %v2748_v47 }
 0x212   : > { %1590 = vmatpush1.bf16.msra.mxu0 %v2220_v58 }
 0x213   : > { %1591 = vmatprep.subr.bf16.mxu0 %v2225_v59 }
 0x216   : > { %1592 = vmatpush1.bf16.msra.mxu0 %v2223_v60 }
 0x217   : > { %1593 = vmatprep.subr.bf16.mxu0 %v2228_v61 }
 0x21a   : > { %1594 = vmatpush1.bf16.msra.mxu0 %v2226_v0 }
 0x21b   : > { %1595 = vmatprep.subr.bf16.mxu0 %v2231_v1 }
 0x21e   : > { %1596 = vmatpush1.bf16.msra.mxu0 %v2229_v2 }
 0x21f   : > { %1597 = vmatprep.subr.bf16.mxu0 %v2234_v3 }
 0x222   : > { %1598 = vmatpush1.bf16.msra.mxu0 %v2232_v4 }
 0x223   : > { %1599 = vmatprep.subr.bf16.mxu0 %v2237_v5 }
 0x226   : > { %1600 = vmatpush1.bf16.msra.mxu0 %v2235_v6 }
 0x227   : > { %1601 = vmatprep.subr.bf16.mxu0 %v2240_v7 }
 0x22a   : > { %1602 = vmatpush1.bf16.msra.mxu0 %v2238_v8 }
 0x22b   : > { %1603 = vmatprep.subr.bf16.mxu0 %v2243_v9 }
 0x22e   : > { %1604 = vmatpush1.bf16.msra.mxu0 %v2241_v10 }
 0x22f   : > { %1605 = vmatprep.subr.bf16.mxu0 %v2246_v11 }
 0x232   : > { %1606 = vmatpush1.bf16.msra.mxu0 %v2244_v12 }
 0x233   : > { %1607 = vmatprep.subr.bf16.mxu0 %v2249_v13 }
 0x236   : > { %1608 = vmatpush1.bf16.msra.mxu0 %v2247_v14 }
 0x237   : > { %1609 = vmatprep.subr.bf16.mxu0 %v2252_v15 }
 0x23a   : > { %1610 = vmatpush1.bf16.msra.mxu0 %v2250_v16 }
 0x23b   : > { %1611 = vmatprep.subr.bf16.mxu0 %v2255_v17 }
 0x23e   : > { %1612 = vmatpush1.bf16.msra.mxu0 %v2253_v19 }
 0x23f   : > { %1613 = vmatprep.subr.bf16.mxu0 %v2258_v21 }
 0x240   : > { %v1134_v41 = vpop.f32.mrb[8].mxu1 }
 0x241   : > { %v1135_v26 = vadd.f32 %v1134_v41, %v730_v22  ;;  %v1136_v27 = vpop.f32.mrb[9].mxu1 }
 0x242   : > { %v1137_v28 = vadd.f32 %v1136_v27, %v734_v23  ;;  %v1138_v29 = vpop.f32.mrb[10].mxu1  ;;  %1614 = vmatpush1.bf16.msra.mxu0 %v2256_v24 }
 0x243   : > { %v1143_v31 = vmax.f32 %v1135_v26, 0.0  ;;  %v1139_v32 = vpop.f32.mrb[11].mxu1  ;;  %1615 = vmatprep.subr.bf16.mxu0 %v2261_v25 }
 0x244   : > { %v1144_v33 = vmax.f32 %v1137_v28, 0.0 }
 0x245   : > { %v1147_v35 = vpack.c.bf16 %v1143_v31, %v1143_v31 }
 0x246   : > { %v1148_v34 = vpack.c.bf16 %v1144_v33, %v1144_v33  ;;  %1616 = vmatpush1.bf16.msra.mxu0 %v2259_v30 }
 0x248   : > { %1617 = vmatprep.mubr.bf16.mxu0 %v1148_v34 }
 0x249   : > { %1618 = vmatmul.mubr.bf16.vlgmr.msra.gmra.mrb[4].mxu0 %v1147_v35 }
 0x31c   : > { %v1619_v39 = vpop.f32.mrb[4].mxu0 }
 0x31d   : > { %v1957_v40 = vadd.f32 %v1619_v39, %v1217_v37  ;;  %v1621_v42 = vpop.f32.mrb[5].mxu0 }
 0x31e   : > { %v1958_v43 = vadd.f32 %v1621_v42, %v1221_v38  ;;  %v1623_v45 = vpop.f32.mrb[6].mxu0 }
 0x31f   : > { %v1945_v46 = vmul.f32 -1.442695, %v1957_v40  ;;  %v1624_v48 = vpop.f32.mrb[7].mxu0 }
 0x320   : > { %v1946_v49 = vmul.f32 -1.442695, %v1958_v43 }
 0x321   : > { %2262 = vpow2.f32 %v1945_v46 }
 0x322   : > { %2264 = vpow2.f32 %v1946_v49 }
 0x32b   : > { %v2263_v50 = vpop.eup %2262 }
 0x32c   : > { %v2265_v51 = vpop.eup %2264  ;;  %v1632_v52 = vadd.f32 1.0, %v2263_v50 }
 0x32d   : > { %v1633_v53 = vadd.f32 1.0, %v2265_v51 }
 0x32e   : > { %2266 = vrcp.f32 %v1632_v52 }
 0x32f   : > { %2268 = vrcp.f32 %v1633_v53 }
 0x338   : > { %v2267_v56 = vpop.eup %2266 }
 0x339   : > { %v2269_v58 = vpop.eup %2268  ;;  %v1638_v59 = vmul.f32 %v2267_v56, %v2760_v62 }
 0x33a   : > { %v1639_v60 = vmul.f32 %v2269_v58, %v2762_v63 }
 0x33b   : > { %v1652_v61 = vmul.f32 %v1645_v55, %v1638_v59 }
 0x33c   : > { %v1653_v0 = vmul.f32 %v1649_v57, %v1639_v60 }
 0x33e   : > { %v1953_v1 = vpack.c.bf16 %v1653_v0, %v1652_v61 }
 0x340   : > { %1662 = vst [vmem:[%s308_s21] sm:$0xff] %v1953_v1 }
 0x341   : > { %2283 = shalt.err (!%p2280_p5)
}
 0x342   : > { %s2284_s20 = scalar_lea.hbm %s3004_s10, 128  ;;  %s2288_s16 = scalar_lea.hbm %s3058_s7, 256 }
 0x343   : > { %p2285_p6 = scmp.ne.s32.totalorder %s3004_s10, %s2284_s20  ;;  %p2289_p10 = scmp.lt.u32.totalorder %s3004_s10, %s3058_s7 }
 0x344   : > { %p2290_p11 = scmp.lt.u32.totalorder %s2288_s16, %s2284_s20  ;;  %p2292_p13 = scmp.lt.u32.totalorder %s2284_s20, %s3004_s10 }
 0x345   : > { %p2286_p7 = pnand %p2285_p6, %p2432_p4 }
 0x346   : > { %p2291_p12 = por %p2290_p11, %p2289_p10 }
 0x347   : > { %p2287_p9 = pneg %p2286_p7 }
 0x348   : > { %p2293_p0 = por %p2292_p13, %p2291_p12 }
 0x34a   : > { %p2294_p1 = pnand %p2293_p0, %p2287_p9 }
 0x34c   : > { %2297 = shalt.err (!%p2294_p1)
}
 0x34d   : > { %1964 = dma.vmem_to_hbm [thread:$0]  (%p2432_p4), %s3006_s30, 128, %s3004_s10, %s1664_s12  }
 0x34e PF: > { %p1970_p2 = scmp.ge.s32.totalorder %s2348_s29, 2  ;;  %s1692_s8 = sand.u32 1, %s2328_s24  }
 0x34f   : > { %s1693_s17 = scalar_lea.sflag [#allocation3], %s1692_s8 }
 0x350   : > { %p1967_p3 = pnand %p1970_p2, %p2439_p8 }
 0x352   : > { %2323 = dma.done.wait (!%p1967_p3), %s1693_s17, 128  }
 0x353   : > { %2325 = vsyncadd (!%p1967_p3), %s1693_s17, 4294967168  ;;  %s20_s29 = sadd.s32 1, %s2348_s29   ;;  %s3061_s24 = smov %s2332_s25 }
 0x354   : > { %p17_p5 = scmp.ge.s32.totalorder %s20_s29, 4   ;;  %s3062_s25 = smov %s2336_s26 }
 0x355   : > { %s3063_s26 = smov %s2445_s14  ;;  %s3064_s27 = smov %s2344_s28 }
 0x356   : > { %s3065_s28 = smov %s3067_s9  ;;  %19 = sbr.rel (!%p17_p5) target bundleno = 4 (0x4), region = 88 }
 0x35d   :  { %1698 = vsyncpa [#allocation3], 1 }
 0x35e   :  { %1700 = vsyncpa [#allocation3 + $0x1], 1 }

</bundles_post_ra>
